<compile_context>
chip_gen: v7x
topology: tpu7x:2x2x1
jax: 0.10.0
libtpu: 0.0.40
codegen_flags: <defaults>
</compile_context>

<pallas_src>
import math

import jax
import jax.numpy as jnp
from jax.experimental import pallas as pl
from jax.experimental.pallas import tpu as pltpu

# ---------------- config (small synthetic BERT) ----------------
VOCAB = 100
HIDDEN = 32
N_HEADS = 4
HEAD_DIM = HIDDEN // N_HEADS
N_LAYERS = 2
INTERMEDIATE = 64
MAX_POS = 16
LN_EPS = 1e-12


def _gelu_tanh(y):
    # TODO(synk): HF BERT uses exact erf-GELU; tanh approximation used here.
    return 0.5 * y * (1.0 + jnp.tanh(0.7978845608028654 * (y + 0.044715 * y * y * y)))


# ---------------- fused Pallas kernel (single invocation, whole batch) ----------------
def _bert_encoder_kernel(emb_ref, maskg_ref, emb_g_ref, emb_b_ref,
                         wqkv_ref, bqkv_ref, wo_ref, bo_ref,
                         ln1_g_ref, ln1_b_ref,
                         w1_ref, b1_ref, w2_ref, b2_ref,
                         ln2_g_ref, ln2_b_ref,
                         out_ref, ctx_ref):
    """Embedding-LN -> N_LAYERS transformer layers (fused QKV, head-batched attention,
    output proj, add+LN, FFN, add+LN) -> mean pool over seq.  All activations and weights
    stay in VMEM/vregs; nothing round-trips to HBM."""
    G, S, _ = maskg_ref.shape          # G = N_HEADS * B
    B = G // N_HEADS
    T = B * S
    H, D = HIDDEN, HEAD_DIM
    scale = 1.0 / math.sqrt(D)

    def layernorm(v, g, b):
        mu = jnp.mean(v, axis=-1, keepdims=True)
        cen = v - mu
        var = jnp.mean(cen * cen, axis=-1, keepdims=True)
        return cen * jax.lax.rsqrt(var + LN_EPS) * g + b

    mask = maskg_ref[...]              # [G, S, S] additive mask, loaded once (hoisted)
    h = layernorm(emb_ref[...], emb_g_ref[...], emb_b_ref[...])     # [T, H]

    for l in range(N_LAYERS):          # static unroll: N_LAYERS is small & fixed
        # --- fused QKV projection: one MXU pass, [B*S, 3H] output ---
        qkv = jnp.dot(h, wqkv_ref[l], preferred_element_type=jnp.float32) + bqkv_ref[l]

        def heads(off):
            # Stack head slices onto a LEADING batch axis (g = head*B + b): the score /
            # context matmuls then run as one leading-batch contraction over all heads
            # and batch elements instead of a per-(b, head) loop of tiny dots.
            # TODO(synk): at head_dim=64 / H=768 these slices fall on 64/128-lane
            # boundaries; here (D=8) they are sub-vreg selects, acceptable at toy size.
            return jnp.concatenate(
                [qkv[:, off + n * D: off + (n + 1) * D].reshape(B, S, D)
                 for n in range(N_HEADS)], axis=0)                   # [G, S, D]

        qg, kg, vg = heads(0), heads(H), heads(2 * H)

        # --- attention: all heads & batch elements in one batched contraction ---
        s = jnp.einsum('gqd,gkd->gqk', qg, kg,
                       preferred_element_type=jnp.float32) * scale + mask
        s = s - jnp.max(s, axis=-1, keepdims=True)
        p = jnp.exp(s)
        # EUP-offloaded reciprocal instead of a VALU divide.
        p = p * pl.reciprocal(jnp.sum(p, axis=-1, keepdims=True), approx=True)
        ctx = jnp.einsum('gqk,gkd->gqd', p, vg,
                         preferred_element_type=jnp.float32)         # [G, S, D]

        # Scatter heads back to token-major [T, H] via a VMEM scratch (no lane concat,
        # no intermediate list materialization).
        for n in range(N_HEADS):
            ctx_ref[:, n * D:(n + 1) * D] = ctx[n * B:(n + 1) * B].reshape(T, D)

        attn = jnp.dot(ctx_ref[...], wo_ref[l],
                       preferred_element_type=jnp.float32) + bo_ref[l]
        h = layernorm(attn + h, ln1_g_ref[l], ln1_b_ref[l])

        # --- FFN ---
        ff = jnp.dot(h, w1_ref[l], preferred_element_type=jnp.float32) + b1_ref[l]
        ff = _gelu_tanh(ff)
        ff = jnp.dot(ff, w2_ref[l], preferred_element_type=jnp.float32) + b2_ref[l]
        h = layernorm(ff + h, ln2_g_ref[l], ln2_b_ref[l])

    # fused mean-pool over the sequence (== last_hidden_state.mean(dim=1))
    # TODO(synk): H=32 < 128 lanes so the final store is a masked vst; irrelevant at toy
    # size, and real KoBERT H=768 is already lane-dense.
    out_ref[...] = jnp.mean(h.reshape(B, S, H), axis=1)              # [B, H]


def bert_feature_extractor(params, input_ids, attention_mask):
    """Forward: BERT(input_ids, attention_mask).last_hidden_state.mean(dim=1)."""
    B, S = input_ids.shape
    H = HIDDEN

    # TODO(synk): embedding-table gather stays in plain JAX (no clean Pallas win at this
    # size); everything after it runs inside one fused Pallas kernel.
    emb = (params["word_emb"][input_ids]
           + params["pos_emb"][jnp.arange(S)][None, :, :]
           + params["type_emb"][0][None, None, :]).astype(jnp.float32)   # token_type==0
    emb2d = emb.reshape(B * S, H)

    # BERT-style additive mask, fully broadcast ONCE here (hoisted out of the kernel's
    # layer/head loops).  Ordering g = head*B + b matches the in-kernel head stacking.
    # Activations stay f32, so -1e9 is safe (use a dtype-aware constant if bf16 ever used).
    mask_add = (1.0 - attention_mask.astype(jnp.float32)) * -1e9          # [B, S]
    mask_g = jnp.broadcast_to(mask_add[None, :, None, :],
                              (N_HEADS, B, S, S)).reshape(N_HEADS * B, S, S)

    # Single invocation (no grid): whole arrays land in VMEM once; at B=2/S=8/H=32 the
    # entire model (< 0.1 MiB of weights) plus activations is far below any VMEM limit.
    pooled = pl.pallas_call(
        _bert_encoder_kernel,
        out_shape=jax.ShapeDtypeStruct((B, H), jnp.float32),
        scratch_shapes=[pltpu.VMEM((B * S, H), jnp.float32)],   # head-scatter ctx buffer
    )(emb2d, mask_g,
      params["emb_ln_g"], params["emb_ln_b"],
      params["wqkv"], params["bqkv"], params["wo"], params["bo"],
      params["ln1_g"], params["ln1_b"],
      params["w1"], params["b1"], params["w2"], params["b2"],
      params["ln2_g"], params["ln2_b"])

    return pooled


# ---------------- synthetic parameters (layer-stacked, fused QKV) ----------------
def init_params(key):
    keys = iter(jax.random.split(key, 16))

    def dense(k, shape):
        return 0.02 * jax.random.normal(k, shape, jnp.float32)

    L, H, I = N_LAYERS, HIDDEN, INTERMEDIATE
    # TODO(synk): at real KoBERT dims store these in bf16 (keep f32 accumulation and
    # f32 LN/softmax math) to halve DMA bytes and use the native MXU input dtype.
    return {
        "word_emb": dense(next(keys), (VOCAB, H)),
        "pos_emb": dense(next(keys), (MAX_POS, H)),
        "type_emb": dense(next(keys), (2, H)),
        "emb_ln_g": jnp.ones((1, H), jnp.float32),
        "emb_ln_b": jnp.zeros((1, H), jnp.float32),
        # fused QKV weight: columns [0:H)=Q, [H:2H)=K, [2H:3H)=V (head-major inside each)
        "wqkv": dense(next(keys), (L, H, 3 * H)),
        "bqkv": jnp.zeros((L, 1, 3 * H), jnp.float32),
        "wo": dense(next(keys), (L, H, H)),
        "bo": jnp.zeros((L, 1, H), jnp.float32),
        "ln1_g": jnp.ones((L, 1, H), jnp.float32),
        "ln1_b": jnp.zeros((L, 1, H), jnp.float32),
        "w1": dense(next(keys), (L, H, I)),
        "b1": jnp.zeros((L, 1, I), jnp.float32),
        "w2": dense(next(keys), (L, I, H)),
        "b2": jnp.zeros((L, 1, H), jnp.float32),
        "ln2_g": jnp.ones((L, 1, H), jnp.float32),
        "ln2_b": jnp.zeros((L, 1, H), jnp.float32),
    }


# ---------------- pure-JAX reference (same math, for correctness check) ----------------
def bert_reference(params, input_ids, attention_mask):
    B, S = input_ids.shape
    HP = jax.lax.Precision.HIGHEST
    scale = 1.0 / math.sqrt(HEAD_DIM)

    emb = (params["word_emb"][input_ids]
           + params["pos_emb"][jnp.arange(S)][None, :, :]
           + params["type_emb"][0][None, None, :]).astype(jnp.float32)
    mask_add = ((1.0 - attention_mask.astype(jnp.float32)) * -1e9)[:, None, :]  # [B,1,S]

    def ln(v, g, b):
        mu = jnp.mean(v, axis=-1, keepdims=True)
        cen = v - mu
        var = jnp.mean(cen * cen, axis=-1, keepdims=True)
        return cen * jax.lax.rsqrt(var + LN_EPS) * g + b

    outs = []
    for bidx in range(B):
        h = ln(emb[bidx], params["emb_ln_g"], params["emb_ln_b"])      # [S, H]
        m = mask_add[bidx]                                             # [1, S]
        for l in range(N_LAYERS):
            qkv = jnp.dot(h, params["wqkv"][l], precision=HP) + params["bqkv"][l]
            q, k, v = (qkv[:, :HIDDEN], qkv[:, HIDDEN:2 * HIDDEN], qkv[:, 2 * HIDDEN:])
            ctx = []
            for hh in range(N_HEADS):
                sl = slice(hh * HEAD_DIM, (hh + 1) * HEAD_DIM)
                s = jnp.dot(q[:, sl], k[:, sl].T, precision=HP) * scale + m
                p = jax.nn.softmax(s, axis=-1)
                ctx.append(jnp.dot(p, v[:, sl], precision=HP))
            ctx = jnp.concatenate(ctx, axis=-1)
            attn = jnp.dot(ctx, params["wo"][l], precision=HP) + params["bo"][l]
            h = ln(attn + h, params["ln1_g"][l], params["ln1_b"][l])
            ff = jnp.dot(h, params["w1"][l], precision=HP) + params["b1"][l]
            ff = _gelu_tanh(ff)
            ff = jnp.dot(ff, params["w2"][l], precision=HP) + params["b2"][l]
            h = ln(ff + h, params["ln2_g"][l], params["ln2_b"][l])
        outs.append(jnp.mean(h, axis=0))
    return jnp.stack(outs)


if __name__ == "__main__":
    key = jax.random.PRNGKey(0)
    pkey, ikey = jax.random.split(key)

    B, S = 2, 8
    params = init_params(pkey)
    input_ids = jax.random.randint(ikey, (B, S), 0, VOCAB, dtype=jnp.int32)
    attention_mask = jnp.ones((B, S), dtype=jnp.int32).at[1, 6:].set(0)  # pad tail of ex.1

    fwd = jax.jit(bert_feature_extractor)
    out = jax.block_until_ready(fwd(params, input_ids, attention_mask))

    assert out.shape == (B, HIDDEN), out.shape
    assert out.dtype == jnp.float32
    assert bool(jnp.all(jnp.isfinite(out)))

    # structural correctness vs. plain-JAX reference
    # (loose tol: MXU f32 dots + approx-reciprocal softmax vs HIGHEST-precision reference)
    ref = bert_reference(params, input_ids, attention_mask)
    assert bool(jnp.allclose(out, ref, atol=2e-2, rtol=2e-2)), float(jnp.max(jnp.abs(out - ref)))

    print("KERNEL_OK")
</pallas_src>

<mosaic_0001>
module attributes {stable_mosaic.version = 11 : i64} {
  func.func @_bert_encoder_kernel(%arg0: memref<16x32xf32, #tpu.memory_space<vmem>>, %arg1: memref<8x8x8xf32, #tpu.memory_space<vmem>>, %arg2: memref<1x32xf32, #tpu.memory_space<vmem>>, %arg3: memref<1x32xf32, #tpu.memory_space<vmem>>, %arg4: memref<2x32x96xf32, #tpu.memory_space<vmem>>, %arg5: memref<2x1x96xf32, #tpu.memory_space<vmem>>, %arg6: memref<2x32x32xf32, #tpu.memory_space<vmem>>, %arg7: memref<2x1x32xf32, #tpu.memory_space<vmem>>, %arg8: memref<2x1x32xf32, #tpu.memory_space<vmem>>, %arg9: memref<2x1x32xf32, #tpu.memory_space<vmem>>, %arg10: memref<2x32x64xf32, #tpu.memory_space<vmem>>, %arg11: memref<2x1x64xf32, #tpu.memory_space<vmem>>, %arg12: memref<2x64x32xf32, #tpu.memory_space<vmem>>, %arg13: memref<2x1x32xf32, #tpu.memory_space<vmem>>, %arg14: memref<2x1x32xf32, #tpu.memory_space<vmem>>, %arg15: memref<2x1x32xf32, #tpu.memory_space<vmem>>, %arg16: memref<2x32xf32, #tpu.memory_space<vmem>>, %arg17: memref<16x32xf32, #tpu.memory_space<vmem>>) attributes {dimension_semantics = [], scalar_prefetch = 0 : i64, scratch_operands = 1 : i64, tpu.core_type = #tpu.core_type<tc>} {
    %c0 = arith.constant 0 : index
    %c0_0 = arith.constant 0 : index
    %c0_1 = arith.constant 0 : index
    %0 = vector.load %arg1[%c0, %c0_0, %c0_1] : memref<8x8x8xf32, #tpu.memory_space<vmem>>, vector<8x8x8xf32>
    %c0_2 = arith.constant 0 : index
    %c0_3 = arith.constant 0 : index
    %1 = vector.load %arg0[%c0_2, %c0_3] : memref<16x32xf32, #tpu.memory_space<vmem>>, vector<16x32xf32>
    %c0_4 = arith.constant 0 : index
    %c0_5 = arith.constant 0 : index
    %2 = vector.load %arg2[%c0_4, %c0_5] : memref<1x32xf32, #tpu.memory_space<vmem>>, vector<1x32xf32>
    %c0_6 = arith.constant 0 : index
    %c0_7 = arith.constant 0 : index
    %3 = vector.load %arg3[%c0_6, %c0_7] : memref<1x32xf32, #tpu.memory_space<vmem>>, vector<1x32xf32>
    %cst = arith.constant dense<0.000000e+00> : vector<16xf32>
    %4 = vector.multi_reduction <add>, %1, %cst [1] : vector<16x32xf32> to vector<16xf32>
    %5 = vector.shape_cast %4 : vector<16xf32> to vector<16x1xf32>
    %cst_8 = arith.constant 3.200000e+01 : f32
    %6 = vector.broadcast %cst_8 : f32 to vector<16x1xf32>
    %7 = arith.divf %5, %6 : vector<16x1xf32>
    %8 = vector.broadcast %7 : vector<16x1xf32> to vector<16x32xf32>
    %9 = arith.subf %1, %8 : vector<16x32xf32>
    %10 = arith.mulf %9, %9 : vector<16x32xf32>
    %cst_9 = arith.constant dense<0.000000e+00> : vector<16xf32>
    %11 = vector.multi_reduction <add>, %10, %cst_9 [1] : vector<16x32xf32> to vector<16xf32>
    %12 = vector.shape_cast %11 : vector<16xf32> to vector<16x1xf32>
    %cst_10 = arith.constant 3.200000e+01 : f32
    %13 = vector.broadcast %cst_10 : f32 to vector<16x1xf32>
    %14 = arith.divf %12, %13 : vector<16x1xf32>
    %cst_11 = arith.constant 9.99999996E-13 : f32
    %15 = vector.broadcast %cst_11 : f32 to vector<16x1xf32>
    %16 = arith.addf %14, %15 : vector<16x1xf32>
    %17 = math.rsqrt %16 : vector<16x1xf32>
    %18 = vector.broadcast %17 : vector<16x1xf32> to vector<16x32xf32>
    %19 = arith.mulf %9, %18 : vector<16x32xf32>
    %20 = vector.broadcast %2 : vector<1x32xf32> to vector<16x32xf32>
    %21 = arith.mulf %19, %20 : vector<16x32xf32>
    %22 = vector.broadcast %3 : vector<1x32xf32> to vector<16x32xf32>
    %23 = arith.addf %21, %22 : vector<16x32xf32>
    %c0_12 = arith.constant 0 : index
    %c0_13 = arith.constant 0 : index
    %c0_14 = arith.constant 0 : index
    %24 = vector.load %arg4[%c0_12, %c0_13, %c0_14] : memref<2x32x96xf32, #tpu.memory_space<vmem>>, vector<1x32x96xf32>
    %25 = vector.shape_cast %24 : vector<1x32x96xf32> to vector<32x96xf32>
    %cst_15 = arith.constant dense<0.000000e+00> : vector<16x96xf32>
    %26 = tpu.matmul %23, %25, %cst_15 {dimension_numbers = #tpu.dot_dimension_numbers<[1], [0], [0], [1], [0, 0, 1, 1], [], []>} : vector<16x32xf32>, vector<32x96xf32>, vector<16x96xf32> -> vector<16x96xf32>
    %c0_16 = arith.constant 0 : index
    %c0_17 = arith.constant 0 : index
    %c0_18 = arith.constant 0 : index
    %27 = vector.load %arg5[%c0_16, %c0_17, %c0_18] : memref<2x1x96xf32, #tpu.memory_space<vmem>>, vector<1x1x96xf32>
    %28 = vector.shape_cast %27 : vector<1x1x96xf32> to vector<1x96xf32>
    %29 = vector.broadcast %28 : vector<1x96xf32> to vector<16x96xf32>
    %30 = arith.addf %26, %29 : vector<16x96xf32>
    %31 = vector.extract_strided_slice %30 {offsets = [0, 0], sizes = [16, 8], strides = [1, 1]} : vector<16x96xf32> to vector<16x8xf32>
    %32 = vector.shape_cast %31 : vector<16x8xf32> to vector<2x8x8xf32>
    %33 = vector.extract_strided_slice %30 {offsets = [0, 8], sizes = [16, 8], strides = [1, 1]} : vector<16x96xf32> to vector<16x8xf32>
    %34 = vector.shape_cast %33 : vector<16x8xf32> to vector<2x8x8xf32>
    %35 = vector.extract_strided_slice %30 {offsets = [0, 16], sizes = [16, 8], strides = [1, 1]} : vector<16x96xf32> to vector<16x8xf32>
    %36 = vector.shape_cast %35 : vector<16x8xf32> to vector<2x8x8xf32>
    %37 = vector.extract_strided_slice %30 {offsets = [0, 24], sizes = [16, 8], strides = [1, 1]} : vector<16x96xf32> to vector<16x8xf32>
    %38 = vector.shape_cast %37 : vector<16x8xf32> to vector<2x8x8xf32>
    %39 = tpu.concatenate %32, %34, %36, %38 in 0 : vector<2x8x8xf32>, vector<2x8x8xf32>, vector<2x8x8xf32>, vector<2x8x8xf32> -> vector<8x8x8xf32>
    %40 = vector.extract_strided_slice %30 {offsets = [0, 32], sizes = [16, 8], strides = [1, 1]} : vector<16x96xf32> to vector<16x8xf32>
    %41 = vector.shape_cast %40 : vector<16x8xf32> to vector<2x8x8xf32>
    %42 = vector.extract_strided_slice %30 {offsets = [0, 40], sizes = [16, 8], strides = [1, 1]} : vector<16x96xf32> to vector<16x8xf32>
    %43 = vector.shape_cast %42 : vector<16x8xf32> to vector<2x8x8xf32>
    %44 = vector.extract_strided_slice %30 {offsets = [0, 48], sizes = [16, 8], strides = [1, 1]} : vector<16x96xf32> to vector<16x8xf32>
    %45 = vector.shape_cast %44 : vector<16x8xf32> to vector<2x8x8xf32>
    %46 = vector.extract_strided_slice %30 {offsets = [0, 56], sizes = [16, 8], strides = [1, 1]} : vector<16x96xf32> to vector<16x8xf32>
    %47 = vector.shape_cast %46 : vector<16x8xf32> to vector<2x8x8xf32>
    %48 = tpu.concatenate %41, %43, %45, %47 in 0 : vector<2x8x8xf32>, vector<2x8x8xf32>, vector<2x8x8xf32>, vector<2x8x8xf32> -> vector<8x8x8xf32>
    %49 = vector.extract_strided_slice %30 {offsets = [0, 64], sizes = [16, 8], strides = [1, 1]} : vector<16x96xf32> to vector<16x8xf32>
    %50 = vector.shape_cast %49 : vector<16x8xf32> to vector<2x8x8xf32>
    %51 = vector.extract_strided_slice %30 {offsets = [0, 72], sizes = [16, 8], strides = [1, 1]} : vector<16x96xf32> to vector<16x8xf32>
    %52 = vector.shape_cast %51 : vector<16x8xf32> to vector<2x8x8xf32>
    %53 = vector.extract_strided_slice %30 {offsets = [0, 80], sizes = [16, 8], strides = [1, 1]} : vector<16x96xf32> to vector<16x8xf32>
    %54 = vector.shape_cast %53 : vector<16x8xf32> to vector<2x8x8xf32>
    %55 = vector.extract_strided_slice %30 {offsets = [0, 88], sizes = [16, 8], strides = [1, 1]} : vector<16x96xf32> to vector<16x8xf32>
    %56 = vector.shape_cast %55 : vector<16x8xf32> to vector<2x8x8xf32>
    %57 = tpu.concatenate %50, %52, %54, %56 in 0 : vector<2x8x8xf32>, vector<2x8x8xf32>, vector<2x8x8xf32>, vector<2x8x8xf32> -> vector<8x8x8xf32>
    "tpu.trace_start"() <{level = 10 : i32, message = "gqd,gkd->gqk"}> : () -> ()
    %cst_19 = arith.constant dense<0.000000e+00> : vector<8x8x8xf32>
    %58 = tpu.matmul %39, %48, %cst_19 {dimension_numbers = #tpu.dot_dimension_numbers<[2], [2], [1], [1], [0, 0, 0, 1, 1, 1], [0], [0]>} : vector<8x8x8xf32>, vector<8x8x8xf32>, vector<8x8x8xf32> -> vector<8x8x8xf32>
    "tpu.trace_stop"() : () -> ()
    %cst_20 = arith.constant 0.353553385 : f32
    %59 = vector.broadcast %cst_20 : f32 to vector<8x8x8xf32>
    %60 = arith.mulf %58, %59 : vector<8x8x8xf32>
    %61 = arith.addf %60, %0 : vector<8x8x8xf32>
    %cst_21 = arith.constant dense<0xFF800000> : vector<8x8xf32>
    %62 = vector.multi_reduction <maximumf>, %61, %cst_21 [2] : vector<8x8x8xf32> to vector<8x8xf32>
    %63 = vector.shape_cast %62 : vector<8x8xf32> to vector<8x8x1xf32>
    %64 = vector.broadcast %63 : vector<8x8x1xf32> to vector<8x8x8xf32>
    %65 = arith.subf %61, %64 : vector<8x8x8xf32>
    %66 = math.exp %65 : vector<8x8x8xf32>
    %cst_22 = arith.constant dense<0.000000e+00> : vector<8x8xf32>
    %67 = vector.multi_reduction <add>, %66, %cst_22 [2] : vector<8x8x8xf32> to vector<8x8xf32>
    %68 = vector.shape_cast %67 : vector<8x8xf32> to vector<8x8x1xf32>
    %69 = tpu.reciprocal %68 {approx = true} : vector<8x8x1xf32> -> vector<8x8x1xf32>
    %70 = vector.broadcast %69 : vector<8x8x1xf32> to vector<8x8x8xf32>
    %71 = arith.mulf %66, %70 : vector<8x8x8xf32>
    "tpu.trace_start"() <{level = 10 : i32, message = "gqk,gkd->gqd"}> : () -> ()
    %cst_23 = arith.constant dense<0.000000e+00> : vector<8x8x8xf32>
    %72 = tpu.matmul %71, %57, %cst_23 {dimension_numbers = #tpu.dot_dimension_numbers<[2], [1], [1], [2], [0, 0, 0, 1, 1, 2], [0], [0]>} : vector<8x8x8xf32>, vector<8x8x8xf32>, vector<8x8x8xf32> -> vector<8x8x8xf32>
    "tpu.trace_stop"() : () -> ()
    %73 = vector.extract_strided_slice %72 {offsets = [0, 0, 0], sizes = [2, 8, 8], strides = [1, 1, 1]} : vector<8x8x8xf32> to vector<2x8x8xf32>
    %74 = vector.shape_cast %73 : vector<2x8x8xf32> to vector<16x8xf32>
    %c0_24 = arith.constant 0 : index
    %c0_25 = arith.constant 0 : index
    %75 = vector.load %arg17[%c0_24, %c0_25] : memref<16x32xf32, #tpu.memory_space<vmem>>, vector<16x8xf32>
    tpu.vector_store %arg17[%c0_24, %c0_25], %74 {strides = array<i32>} : memref<16x32xf32, #tpu.memory_space<vmem>>, vector<16x8xf32>,
    %76 = vector.extract_strided_slice %72 {offsets = [2, 0, 0], sizes = [2, 8, 8], strides = [1, 1, 1]} : vector<8x8x8xf32> to vector<2x8x8xf32>
    %77 = vector.shape_cast %76 : vector<2x8x8xf32> to vector<16x8xf32>
    %c0_26 = arith.constant 0 : index
    %c8 = arith.constant 8 : index
    %78 = vector.load %arg17[%c0_26, %c8] : memref<16x32xf32, #tpu.memory_space<vmem>>, vector<16x8xf32>
    tpu.vector_store %arg17[%c0_26, %c8], %77 {strides = array<i32>} : memref<16x32xf32, #tpu.memory_space<vmem>>, vector<16x8xf32>,
    %79 = vector.extract_strided_slice %72 {offsets = [4, 0, 0], sizes = [2, 8, 8], strides = [1, 1, 1]} : vector<8x8x8xf32> to vector<2x8x8xf32>
    %80 = vector.shape_cast %79 : vector<2x8x8xf32> to vector<16x8xf32>
    %c0_27 = arith.constant 0 : index
    %c16 = arith.constant 16 : index
    %81 = vector.load %arg17[%c0_27, %c16] : memref<16x32xf32, #tpu.memory_space<vmem>>, vector<16x8xf32>
    tpu.vector_store %arg17[%c0_27, %c16], %80 {strides = array<i32>} : memref<16x32xf32, #tpu.memory_space<vmem>>, vector<16x8xf32>,
    %82 = vector.extract_strided_slice %72 {offsets = [6, 0, 0], sizes = [2, 8, 8], strides = [1, 1, 1]} : vector<8x8x8xf32> to vector<2x8x8xf32>
    %83 = vector.shape_cast %82 : vector<2x8x8xf32> to vector<16x8xf32>
    %c0_28 = arith.constant 0 : index
    %c24 = arith.constant 24 : index
    %84 = vector.load %arg17[%c0_28, %c24] : memref<16x32xf32, #tpu.memory_space<vmem>>, vector<16x8xf32>
    tpu.vector_store %arg17[%c0_28, %c24], %83 {strides = array<i32>} : memref<16x32xf32, #tpu.memory_space<vmem>>, vector<16x8xf32>,
    %c0_29 = arith.constant 0 : index
    %c0_30 = arith.constant 0 : index
    %85 = vector.load %arg17[%c0_29, %c0_30] : memref<16x32xf32, #tpu.memory_space<vmem>>, vector<16x32xf32>
    %c0_31 = arith.constant 0 : index
    %c0_32 = arith.constant 0 : index
    %c0_33 = arith.constant 0 : index
    %86 = vector.load %arg6[%c0_31, %c0_32, %c0_33] : memref<2x32x32xf32, #tpu.memory_space<vmem>>, vector<1x32x32xf32>
    %87 = vector.shape_cast %86 : vector<1x32x32xf32> to vector<32x32xf32>
    %cst_34 = arith.constant dense<0.000000e+00> : vector<16x32xf32>
    %88 = tpu.matmul %85, %87, %cst_34 {dimension_numbers = #tpu.dot_dimension_numbers<[1], [0], [0], [1], [0, 0, 1, 1], [], []>} : vector<16x32xf32>, vector<32x32xf32>, vector<16x32xf32> -> vector<16x32xf32>
    %c0_35 = arith.constant 0 : index
    %c0_36 = arith.constant 0 : index
    %c0_37 = arith.constant 0 : index
    %89 = vector.load %arg7[%c0_35, %c0_36, %c0_37] : memref<2x1x32xf32, #tpu.memory_space<vmem>>, vector<1x1x32xf32>
    %90 = vector.shape_cast %89 : vector<1x1x32xf32> to vector<1x32xf32>
    %91 = vector.broadcast %90 : vector<1x32xf32> to vector<16x32xf32>
    %92 = arith.addf %88, %91 : vector<16x32xf32>
    %93 = arith.addf %92, %23 : vector<16x32xf32>
    %c0_38 = arith.constant 0 : index
    %c0_39 = arith.constant 0 : index
    %c0_40 = arith.constant 0 : index
    %94 = vector.load %arg8[%c0_38, %c0_39, %c0_40] : memref<2x1x32xf32, #tpu.memory_space<vmem>>, vector<1x1x32xf32>
    %95 = vector.shape_cast %94 : vector<1x1x32xf32> to vector<1x32xf32>
    %c0_41 = arith.constant 0 : index
    %c0_42 = arith.constant 0 : index
    %c0_43 = arith.constant 0 : index
    %96 = vector.load %arg9[%c0_41, %c0_42, %c0_43] : memref<2x1x32xf32, #tpu.memory_space<vmem>>, vector<1x1x32xf32>
    %97 = vector.shape_cast %96 : vector<1x1x32xf32> to vector<1x32xf32>
    %cst_44 = arith.constant dense<0.000000e+00> : vector<16xf32>
    %98 = vector.multi_reduction <add>, %93, %cst_44 [1] : vector<16x32xf32> to vector<16xf32>
    %99 = vector.shape_cast %98 : vector<16xf32> to vector<16x1xf32>
    %cst_45 = arith.constant 3.200000e+01 : f32
    %100 = vector.broadcast %cst_45 : f32 to vector<16x1xf32>
    %101 = arith.divf %99, %100 : vector<16x1xf32>
    %102 = vector.broadcast %101 : vector<16x1xf32> to vector<16x32xf32>
    %103 = arith.subf %93, %102 : vector<16x32xf32>
    %104 = arith.mulf %103, %103 : vector<16x32xf32>
    %cst_46 = arith.constant dense<0.000000e+00> : vector<16xf32>
    %105 = vector.multi_reduction <add>, %104, %cst_46 [1] : vector<16x32xf32> to vector<16xf32>
    %106 = vector.shape_cast %105 : vector<16xf32> to vector<16x1xf32>
    %cst_47 = arith.constant 3.200000e+01 : f32
    %107 = vector.broadcast %cst_47 : f32 to vector<16x1xf32>
    %108 = arith.divf %106, %107 : vector<16x1xf32>
    %cst_48 = arith.constant 9.99999996E-13 : f32
    %109 = vector.broadcast %cst_48 : f32 to vector<16x1xf32>
    %110 = arith.addf %108, %109 : vector<16x1xf32>
    %111 = math.rsqrt %110 : vector<16x1xf32>
    %112 = vector.broadcast %111 : vector<16x1xf32> to vector<16x32xf32>
    %113 = arith.mulf %103, %112 : vector<16x32xf32>
    %114 = vector.broadcast %95 : vector<1x32xf32> to vector<16x32xf32>
    %115 = arith.mulf %113, %114 : vector<16x32xf32>
    %116 = vector.broadcast %97 : vector<1x32xf32> to vector<16x32xf32>
    %117 = arith.addf %115, %116 : vector<16x32xf32>
    %c0_49 = arith.constant 0 : index
    %c0_50 = arith.constant 0 : index
    %c0_51 = arith.constant 0 : index
    %118 = vector.load %arg10[%c0_49, %c0_50, %c0_51] : memref<2x32x64xf32, #tpu.memory_space<vmem>>, vector<1x32x64xf32>
    %119 = vector.shape_cast %118 : vector<1x32x64xf32> to vector<32x64xf32>
    %cst_52 = arith.constant dense<0.000000e+00> : vector<16x64xf32>
    %120 = tpu.matmul %117, %119, %cst_52 {dimension_numbers = #tpu.dot_dimension_numbers<[1], [0], [0], [1], [0, 0, 1, 1], [], []>} : vector<16x32xf32>, vector<32x64xf32>, vector<16x64xf32> -> vector<16x64xf32>
    %c0_53 = arith.constant 0 : index
    %c0_54 = arith.constant 0 : index
    %c0_55 = arith.constant 0 : index
    %121 = vector.load %arg11[%c0_53, %c0_54, %c0_55] : memref<2x1x64xf32, #tpu.memory_space<vmem>>, vector<1x1x64xf32>
    %122 = vector.shape_cast %121 : vector<1x1x64xf32> to vector<1x64xf32>
    %123 = vector.broadcast %122 : vector<1x64xf32> to vector<16x64xf32>
    %124 = arith.addf %120, %123 : vector<16x64xf32>
    %cst_56 = arith.constant 5.000000e-01 : f32
    %125 = vector.broadcast %cst_56 : f32 to vector<16x64xf32>
    %126 = arith.mulf %125, %124 : vector<16x64xf32>
    %cst_57 = arith.constant 4.471500e-02 : f32
    %127 = vector.broadcast %cst_57 : f32 to vector<16x64xf32>
    %128 = arith.mulf %127, %124 : vector<16x64xf32>
    %129 = arith.mulf %128, %124 : vector<16x64xf32>
    %130 = arith.mulf %129, %124 : vector<16x64xf32>
    %131 = arith.addf %124, %130 : vector<16x64xf32>
    %cst_58 = arith.constant 0.797884583 : f32
    %132 = vector.broadcast %cst_58 : f32 to vector<16x64xf32>
    %133 = arith.mulf %132, %131 : vector<16x64xf32>
    %134 = math.tanh %133 : vector<16x64xf32>
    %cst_59 = arith.constant 1.000000e+00 : f32
    %135 = vector.broadcast %cst_59 : f32 to vector<16x64xf32>
    %136 = arith.addf %135, %134 : vector<16x64xf32>
    %137 = arith.mulf %126, %136 : vector<16x64xf32>
    %c0_60 = arith.constant 0 : index
    %c0_61 = arith.constant 0 : index
    %c0_62 = arith.constant 0 : index
    %138 = vector.load %arg12[%c0_60, %c0_61, %c0_62] : memref<2x64x32xf32, #tpu.memory_space<vmem>>, vector<1x64x32xf32>
    %139 = vector.shape_cast %138 : vector<1x64x32xf32> to vector<64x32xf32>
    %cst_63 = arith.constant dense<0.000000e+00> : vector<16x32xf32>
    %140 = tpu.matmul %137, %139, %cst_63 {dimension_numbers = #tpu.dot_dimension_numbers<[1], [0], [0], [1], [0, 0, 1, 1], [], []>} : vector<16x64xf32>, vector<64x32xf32>, vector<16x32xf32> -> vector<16x32xf32>
    %c0_64 = arith.constant 0 : index
    %c0_65 = arith.constant 0 : index
    %c0_66 = arith.constant 0 : index
    %141 = vector.load %arg13[%c0_64, %c0_65, %c0_66] : memref<2x1x32xf32, #tpu.memory_space<vmem>>, vector<1x1x32xf32>
    %142 = vector.shape_cast %141 : vector<1x1x32xf32> to vector<1x32xf32>
    %143 = vector.broadcast %142 : vector<1x32xf32> to vector<16x32xf32>
    %144 = arith.addf %140, %143 : vector<16x32xf32>
    %145 = arith.addf %144, %117 : vector<16x32xf32>
    %c0_67 = arith.constant 0 : index
    %c0_68 = arith.constant 0 : index
    %c0_69 = arith.constant 0 : index
    %146 = vector.load %arg14[%c0_67, %c0_68, %c0_69] : memref<2x1x32xf32, #tpu.memory_space<vmem>>, vector<1x1x32xf32>
    %147 = vector.shape_cast %146 : vector<1x1x32xf32> to vector<1x32xf32>
    %c0_70 = arith.constant 0 : index
    %c0_71 = arith.constant 0 : index
    %c0_72 = arith.constant 0 : index
    %148 = vector.load %arg15[%c0_70, %c0_71, %c0_72] : memref<2x1x32xf32, #tpu.memory_space<vmem>>, vector<1x1x32xf32>
    %149 = vector.shape_cast %148 : vector<1x1x32xf32> to vector<1x32xf32>
    %cst_73 = arith.constant dense<0.000000e+00> : vector<16xf32>
    %150 = vector.multi_reduction <add>, %145, %cst_73 [1] : vector<16x32xf32> to vector<16xf32>
    %151 = vector.shape_cast %150 : vector<16xf32> to vector<16x1xf32>
    %cst_74 = arith.constant 3.200000e+01 : f32
    %152 = vector.broadcast %cst_74 : f32 to vector<16x1xf32>
    %153 = arith.divf %151, %152 : vector<16x1xf32>
    %154 = vector.broadcast %153 : vector<16x1xf32> to vector<16x32xf32>
    %155 = arith.subf %145, %154 : vector<16x32xf32>
    %156 = arith.mulf %155, %155 : vector<16x32xf32>
    %cst_75 = arith.constant dense<0.000000e+00> : vector<16xf32>
    %157 = vector.multi_reduction <add>, %156, %cst_75 [1] : vector<16x32xf32> to vector<16xf32>
    %158 = vector.shape_cast %157 : vector<16xf32> to vector<16x1xf32>
    %cst_76 = arith.constant 3.200000e+01 : f32
    %159 = vector.broadcast %cst_76 : f32 to vector<16x1xf32>
    %160 = arith.divf %158, %159 : vector<16x1xf32>
    %cst_77 = arith.constant 9.99999996E-13 : f32
    %161 = vector.broadcast %cst_77 : f32 to vector<16x1xf32>
    %162 = arith.addf %160, %161 : vector<16x1xf32>
    %163 = math.rsqrt %162 : vector<16x1xf32>
    %164 = vector.broadcast %163 : vector<16x1xf32> to vector<16x32xf32>
    %165 = arith.mulf %155, %164 : vector<16x32xf32>
    %166 = vector.broadcast %147 : vector<1x32xf32> to vector<16x32xf32>
    %167 = arith.mulf %165, %166 : vector<16x32xf32>
    %168 = vector.broadcast %149 : vector<1x32xf32> to vector<16x32xf32>
    %169 = arith.addf %167, %168 : vector<16x32xf32>
    %c1 = arith.constant 1 : index
    %c0_78 = arith.constant 0 : index
    %c0_79 = arith.constant 0 : index
    %170 = vector.load %arg4[%c1, %c0_78, %c0_79] : memref<2x32x96xf32, #tpu.memory_space<vmem>>, vector<1x32x96xf32>
    %171 = vector.shape_cast %170 : vector<1x32x96xf32> to vector<32x96xf32>
    %cst_80 = arith.constant dense<0.000000e+00> : vector<16x96xf32>
    %172 = tpu.matmul %169, %171, %cst_80 {dimension_numbers = #tpu.dot_dimension_numbers<[1], [0], [0], [1], [0, 0, 1, 1], [], []>} : vector<16x32xf32>, vector<32x96xf32>, vector<16x96xf32> -> vector<16x96xf32>
    %c1_81 = arith.constant 1 : index
    %c0_82 = arith.constant 0 : index
    %c0_83 = arith.constant 0 : index
    %173 = vector.load %arg5[%c1_81, %c0_82, %c0_83] : memref<2x1x96xf32, #tpu.memory_space<vmem>>, vector<1x1x96xf32>
    %174 = vector.shape_cast %173 : vector<1x1x96xf32> to vector<1x96xf32>
    %175 = vector.broadcast %174 : vector<1x96xf32> to vector<16x96xf32>
    %176 = arith.addf %172, %175 : vector<16x96xf32>
    %177 = vector.extract_strided_slice %176 {offsets = [0, 0], sizes = [16, 8], strides = [1, 1]} : vector<16x96xf32> to vector<16x8xf32>
    %178 = vector.shape_cast %177 : vector<16x8xf32> to vector<2x8x8xf32>
    %179 = vector.extract_strided_slice %176 {offsets = [0, 8], sizes = [16, 8], strides = [1, 1]} : vector<16x96xf32> to vector<16x8xf32>
    %180 = vector.shape_cast %179 : vector<16x8xf32> to vector<2x8x8xf32>
    %181 = vector.extract_strided_slice %176 {offsets = [0, 16], sizes = [16, 8], strides = [1, 1]} : vector<16x96xf32> to vector<16x8xf32>
    %182 = vector.shape_cast %181 : vector<16x8xf32> to vector<2x8x8xf32>
    %183 = vector.extract_strided_slice %176 {offsets = [0, 24], sizes = [16, 8], strides = [1, 1]} : vector<16x96xf32> to vector<16x8xf32>
    %184 = vector.shape_cast %183 : vector<16x8xf32> to vector<2x8x8xf32>
    %185 = tpu.concatenate %178, %180, %182, %184 in 0 : vector<2x8x8xf32>, vector<2x8x8xf32>, vector<2x8x8xf32>, vector<2x8x8xf32> -> vector<8x8x8xf32>
    %186 = vector.extract_strided_slice %176 {offsets = [0, 32], sizes = [16, 8], strides = [1, 1]} : vector<16x96xf32> to vector<16x8xf32>
    %187 = vector.shape_cast %186 : vector<16x8xf32> to vector<2x8x8xf32>
    %188 = vector.extract_strided_slice %176 {offsets = [0, 40], sizes = [16, 8], strides = [1, 1]} : vector<16x96xf32> to vector<16x8xf32>
    %189 = vector.shape_cast %188 : vector<16x8xf32> to vector<2x8x8xf32>
    %190 = vector.extract_strided_slice %176 {offsets = [0, 48], sizes = [16, 8], strides = [1, 1]} : vector<16x96xf32> to vector<16x8xf32>
    %191 = vector.shape_cast %190 : vector<16x8xf32> to vector<2x8x8xf32>
    %192 = vector.extract_strided_slice %176 {offsets = [0, 56], sizes = [16, 8], strides = [1, 1]} : vector<16x96xf32> to vector<16x8xf32>
    %193 = vector.shape_cast %192 : vector<16x8xf32> to vector<2x8x8xf32>
    %194 = tpu.concatenate %187, %189, %191, %193 in 0 : vector<2x8x8xf32>, vector<2x8x8xf32>, vector<2x8x8xf32>, vector<2x8x8xf32> -> vector<8x8x8xf32>
    %195 = vector.extract_strided_slice %176 {offsets = [0, 64], sizes = [16, 8], strides = [1, 1]} : vector<16x96xf32> to vector<16x8xf32>
    %196 = vector.shape_cast %195 : vector<16x8xf32> to vector<2x8x8xf32>
    %197 = vector.extract_strided_slice %176 {offsets = [0, 72], sizes = [16, 8], strides = [1, 1]} : vector<16x96xf32> to vector<16x8xf32>
    %198 = vector.shape_cast %197 : vector<16x8xf32> to vector<2x8x8xf32>
    %199 = vector.extract_strided_slice %176 {offsets = [0, 80], sizes = [16, 8], strides = [1, 1]} : vector<16x96xf32> to vector<16x8xf32>
    %200 = vector.shape_cast %199 : vector<16x8xf32> to vector<2x8x8xf32>
    %201 = vector.extract_strided_slice %176 {offsets = [0, 88], sizes = [16, 8], strides = [1, 1]} : vector<16x96xf32> to vector<16x8xf32>
    %202 = vector.shape_cast %201 : vector<16x8xf32> to vector<2x8x8xf32>
    %203 = tpu.concatenate %196, %198, %200, %202 in 0 : vector<2x8x8xf32>, vector<2x8x8xf32>, vector<2x8x8xf32>, vector<2x8x8xf32> -> vector<8x8x8xf32>
    "tpu.trace_start"() <{level = 10 : i32, message = "gqd,gkd->gqk"}> : () -> ()
    %cst_84 = arith.constant dense<0.000000e+00> : vector<8x8x8xf32>
    %204 = tpu.matmul %185, %194, %cst_84 {dimension_numbers = #tpu.dot_dimension_numbers<[2], [2], [1], [1], [0, 0, 0, 1, 1, 1], [0], [0]>} : vector<8x8x8xf32>, vector<8x8x8xf32>, vector<8x8x8xf32> -> vector<8x8x8xf32>
    "tpu.trace_stop"() : () -> ()
    %cst_85 = arith.constant 0.353553385 : f32
    %205 = vector.broadcast %cst_85 : f32 to vector<8x8x8xf32>
    %206 = arith.mulf %204, %205 : vector<8x8x8xf32>
    %207 = arith.addf %206, %0 : vector<8x8x8xf32>
    %cst_86 = arith.constant dense<0xFF800000> : vector<8x8xf32>
    %208 = vector.multi_reduction <maximumf>, %207, %cst_86 [2] : vector<8x8x8xf32> to vector<8x8xf32>
    %209 = vector.shape_cast %208 : vector<8x8xf32> to vector<8x8x1xf32>
    %210 = vector.broadcast %209 : vector<8x8x1xf32> to vector<8x8x8xf32>
    %211 = arith.subf %207, %210 : vector<8x8x8xf32>
    %212 = math.exp %211 : vector<8x8x8xf32>
    %cst_87 = arith.constant dense<0.000000e+00> : vector<8x8xf32>
    %213 = vector.multi_reduction <add>, %212, %cst_87 [2] : vector<8x8x8xf32> to vector<8x8xf32>
    %214 = vector.shape_cast %213 : vector<8x8xf32> to vector<8x8x1xf32>
    %215 = tpu.reciprocal %214 {approx = true} : vector<8x8x1xf32> -> vector<8x8x1xf32>
    %216 = vector.broadcast %215 : vector<8x8x1xf32> to vector<8x8x8xf32>
    %217 = arith.mulf %212, %216 : vector<8x8x8xf32>
    "tpu.trace_start"() <{level = 10 : i32, message = "gqk,gkd->gqd"}> : () -> ()
    %cst_88 = arith.constant dense<0.000000e+00> : vector<8x8x8xf32>
    %218 = tpu.matmul %217, %203, %cst_88 {dimension_numbers = #tpu.dot_dimension_numbers<[2], [1], [1], [2], [0, 0, 0, 1, 1, 2], [0], [0]>} : vector<8x8x8xf32>, vector<8x8x8xf32>, vector<8x8x8xf32> -> vector<8x8x8xf32>
    "tpu.trace_stop"() : () -> ()
    %219 = vector.extract_strided_slice %218 {offsets = [0, 0, 0], sizes = [2, 8, 8], strides = [1, 1, 1]} : vector<8x8x8xf32> to vector<2x8x8xf32>
    %220 = vector.shape_cast %219 : vector<2x8x8xf32> to vector<16x8xf32>
    %c0_89 = arith.constant 0 : index
    %c0_90 = arith.constant 0 : index
    %221 = vector.load %arg17[%c0_89, %c0_90] : memref<16x32xf32, #tpu.memory_space<vmem>>, vector<16x8xf32>
    tpu.vector_store %arg17[%c0_89, %c0_90], %220 {strides = array<i32>} : memref<16x32xf32, #tpu.memory_space<vmem>>, vector<16x8xf32>,
    %222 = vector.extract_strided_slice %218 {offsets = [2, 0, 0], sizes = [2, 8, 8], strides = [1, 1, 1]} : vector<8x8x8xf32> to vector<2x8x8xf32>
    %223 = vector.shape_cast %222 : vector<2x8x8xf32> to vector<16x8xf32>
    %c0_91 = arith.constant 0 : index
    %c8_92 = arith.constant 8 : index
    %224 = vector.load %arg17[%c0_91, %c8_92] : memref<16x32xf32, #tpu.memory_space<vmem>>, vector<16x8xf32>
    tpu.vector_store %arg17[%c0_91, %c8_92], %223 {strides = array<i32>} : memref<16x32xf32, #tpu.memory_space<vmem>>, vector<16x8xf32>,
    %225 = vector.extract_strided_slice %218 {offsets = [4, 0, 0], sizes = [2, 8, 8], strides = [1, 1, 1]} : vector<8x8x8xf32> to vector<2x8x8xf32>
    %226 = vector.shape_cast %225 : vector<2x8x8xf32> to vector<16x8xf32>
    %c0_93 = arith.constant 0 : index
    %c16_94 = arith.constant 16 : index
    %227 = vector.load %arg17[%c0_93, %c16_94] : memref<16x32xf32, #tpu.memory_space<vmem>>, vector<16x8xf32>
    tpu.vector_store %arg17[%c0_93, %c16_94], %226 {strides = array<i32>} : memref<16x32xf32, #tpu.memory_space<vmem>>, vector<16x8xf32>,
    %228 = vector.extract_strided_slice %218 {offsets = [6, 0, 0], sizes = [2, 8, 8], strides = [1, 1, 1]} : vector<8x8x8xf32> to vector<2x8x8xf32>
    %229 = vector.shape_cast %228 : vector<2x8x8xf32> to vector<16x8xf32>
    %c0_95 = arith.constant 0 : index
    %c24_96 = arith.constant 24 : index
    %230 = vector.load %arg17[%c0_95, %c24_96] : memref<16x32xf32, #tpu.memory_space<vmem>>, vector<16x8xf32>
    tpu.vector_store %arg17[%c0_95, %c24_96], %229 {strides = array<i32>} : memref<16x32xf32, #tpu.memory_space<vmem>>, vector<16x8xf32>,
    %c0_97 = arith.constant 0 : index
    %c0_98 = arith.constant 0 : index
    %231 = vector.load %arg17[%c0_97, %c0_98] : memref<16x32xf32, #tpu.memory_space<vmem>>, vector<16x32xf32>
    %c1_99 = arith.constant 1 : index
    %c0_100 = arith.constant 0 : index
    %c0_101 = arith.constant 0 : index
    %232 = vector.load %arg6[%c1_99, %c0_100, %c0_101] : memref<2x32x32xf32, #tpu.memory_space<vmem>>, vector<1x32x32xf32>
    %233 = vector.shape_cast %232 : vector<1x32x32xf32> to vector<32x32xf32>
    %cst_102 = arith.constant dense<0.000000e+00> : vector<16x32xf32>
    %234 = tpu.matmul %231, %233, %cst_102 {dimension_numbers = #tpu.dot_dimension_numbers<[1], [0], [0], [1], [0, 0, 1, 1], [], []>} : vector<16x32xf32>, vector<32x32xf32>, vector<16x32xf32> -> vector<16x32xf32>
    %c1_103 = arith.constant 1 : index
    %c0_104 = arith.constant 0 : index
    %c0_105 = arith.constant 0 : index
    %235 = vector.load %arg7[%c1_103, %c0_104, %c0_105] : memref<2x1x32xf32, #tpu.memory_space<vmem>>, vector<1x1x32xf32>
    %236 = vector.shape_cast %235 : vector<1x1x32xf32> to vector<1x32xf32>
    %237 = vector.broadcast %236 : vector<1x32xf32> to vector<16x32xf32>
    %238 = arith.addf %234, %237 : vector<16x32xf32>
    %239 = arith.addf %238, %169 : vector<16x32xf32>
    %c1_106 = arith.constant 1 : index
    %c0_107 = arith.constant 0 : index
    %c0_108 = arith.constant 0 : index
    %240 = vector.load %arg8[%c1_106, %c0_107, %c0_108] : memref<2x1x32xf32, #tpu.memory_space<vmem>>, vector<1x1x32xf32>
    %241 = vector.shape_cast %240 : vector<1x1x32xf32> to vector<1x32xf32>
    %c1_109 = arith.constant 1 : index
    %c0_110 = arith.constant 0 : index
    %c0_111 = arith.constant 0 : index
    %242 = vector.load %arg9[%c1_109, %c0_110, %c0_111] : memref<2x1x32xf32, #tpu.memory_space<vmem>>, vector<1x1x32xf32>
    %243 = vector.shape_cast %242 : vector<1x1x32xf32> to vector<1x32xf32>
    %cst_112 = arith.constant dense<0.000000e+00> : vector<16xf32>
    %244 = vector.multi_reduction <add>, %239, %cst_112 [1] : vector<16x32xf32> to vector<16xf32>
    %245 = vector.shape_cast %244 : vector<16xf32> to vector<16x1xf32>
    %cst_113 = arith.constant 3.200000e+01 : f32
    %246 = vector.broadcast %cst_113 : f32 to vector<16x1xf32>
    %247 = arith.divf %245, %246 : vector<16x1xf32>
    %248 = vector.broadcast %247 : vector<16x1xf32> to vector<16x32xf32>
    %249 = arith.subf %239, %248 : vector<16x32xf32>
    %250 = arith.mulf %249, %249 : vector<16x32xf32>
    %cst_114 = arith.constant dense<0.000000e+00> : vector<16xf32>
    %251 = vector.multi_reduction <add>, %250, %cst_114 [1] : vector<16x32xf32> to vector<16xf32>
    %252 = vector.shape_cast %251 : vector<16xf32> to vector<16x1xf32>
    %cst_115 = arith.constant 3.200000e+01 : f32
    %253 = vector.broadcast %cst_115 : f32 to vector<16x1xf32>
    %254 = arith.divf %252, %253 : vector<16x1xf32>
    %cst_116 = arith.constant 9.99999996E-13 : f32
    %255 = vector.broadcast %cst_116 : f32 to vector<16x1xf32>
    %256 = arith.addf %254, %255 : vector<16x1xf32>
    %257 = math.rsqrt %256 : vector<16x1xf32>
    %258 = vector.broadcast %257 : vector<16x1xf32> to vector<16x32xf32>
    %259 = arith.mulf %249, %258 : vector<16x32xf32>
    %260 = vector.broadcast %241 : vector<1x32xf32> to vector<16x32xf32>
    %261 = arith.mulf %259, %260 : vector<16x32xf32>
    %262 = vector.broadcast %243 : vector<1x32xf32> to vector<16x32xf32>
    %263 = arith.addf %261, %262 : vector<16x32xf32>
    %c1_117 = arith.constant 1 : index
    %c0_118 = arith.constant 0 : index
    %c0_119 = arith.constant 0 : index
    %264 = vector.load %arg10[%c1_117, %c0_118, %c0_119] : memref<2x32x64xf32, #tpu.memory_space<vmem>>, vector<1x32x64xf32>
    %265 = vector.shape_cast %264 : vector<1x32x64xf32> to vector<32x64xf32>
    %cst_120 = arith.constant dense<0.000000e+00> : vector<16x64xf32>
    %266 = tpu.matmul %263, %265, %cst_120 {dimension_numbers = #tpu.dot_dimension_numbers<[1], [0], [0], [1], [0, 0, 1, 1], [], []>} : vector<16x32xf32>, vector<32x64xf32>, vector<16x64xf32> -> vector<16x64xf32>
    %c1_121 = arith.constant 1 : index
    %c0_122 = arith.constant 0 : index
    %c0_123 = arith.constant 0 : index
    %267 = vector.load %arg11[%c1_121, %c0_122, %c0_123] : memref<2x1x64xf32, #tpu.memory_space<vmem>>, vector<1x1x64xf32>
    %268 = vector.shape_cast %267 : vector<1x1x64xf32> to vector<1x64xf32>
    %269 = vector.broadcast %268 : vector<1x64xf32> to vector<16x64xf32>
    %270 = arith.addf %266, %269 : vector<16x64xf32>
    %cst_124 = arith.constant 5.000000e-01 : f32
    %271 = vector.broadcast %cst_124 : f32 to vector<16x64xf32>
    %272 = arith.mulf %271, %270 : vector<16x64xf32>
    %cst_125 = arith.constant 4.471500e-02 : f32
    %273 = vector.broadcast %cst_125 : f32 to vector<16x64xf32>
    %274 = arith.mulf %273, %270 : vector<16x64xf32>
    %275 = arith.mulf %274, %270 : vector<16x64xf32>
    %276 = arith.mulf %275, %270 : vector<16x64xf32>
    %277 = arith.addf %270, %276 : vector<16x64xf32>
    %cst_126 = arith.constant 0.797884583 : f32
    %278 = vector.broadcast %cst_126 : f32 to vector<16x64xf32>
    %279 = arith.mulf %278, %277 : vector<16x64xf32>
    %280 = math.tanh %279 : vector<16x64xf32>
    %cst_127 = arith.constant 1.000000e+00 : f32
    %281 = vector.broadcast %cst_127 : f32 to vector<16x64xf32>
    %282 = arith.addf %281, %280 : vector<16x64xf32>
    %283 = arith.mulf %272, %282 : vector<16x64xf32>
    %c1_128 = arith.constant 1 : index
    %c0_129 = arith.constant 0 : index
    %c0_130 = arith.constant 0 : index
    %284 = vector.load %arg12[%c1_128, %c0_129, %c0_130] : memref<2x64x32xf32, #tpu.memory_space<vmem>>, vector<1x64x32xf32>
    %285 = vector.shape_cast %284 : vector<1x64x32xf32> to vector<64x32xf32>
    %cst_131 = arith.constant dense<0.000000e+00> : vector<16x32xf32>
    %286 = tpu.matmul %283, %285, %cst_131 {dimension_numbers = #tpu.dot_dimension_numbers<[1], [0], [0], [1], [0, 0, 1, 1], [], []>} : vector<16x64xf32>, vector<64x32xf32>, vector<16x32xf32> -> vector<16x32xf32>
    %c1_132 = arith.constant 1 : index
    %c0_133 = arith.constant 0 : index
    %c0_134 = arith.constant 0 : index
    %287 = vector.load %arg13[%c1_132, %c0_133, %c0_134] : memref<2x1x32xf32, #tpu.memory_space<vmem>>, vector<1x1x32xf32>
    %288 = vector.shape_cast %287 : vector<1x1x32xf32> to vector<1x32xf32>
    %289 = vector.broadcast %288 : vector<1x32xf32> to vector<16x32xf32>
    %290 = arith.addf %286, %289 : vector<16x32xf32>
    %291 = arith.addf %290, %263 : vector<16x32xf32>
    %c1_135 = arith.constant 1 : index
    %c0_136 = arith.constant 0 : index
    %c0_137 = arith.constant 0 : index
    %292 = vector.load %arg14[%c1_135, %c0_136, %c0_137] : memref<2x1x32xf32, #tpu.memory_space<vmem>>, vector<1x1x32xf32>
    %293 = vector.shape_cast %292 : vector<1x1x32xf32> to vector<1x32xf32>
    %c1_138 = arith.constant 1 : index
    %c0_139 = arith.constant 0 : index
    %c0_140 = arith.constant 0 : index
    %294 = vector.load %arg15[%c1_138, %c0_139, %c0_140] : memref<2x1x32xf32, #tpu.memory_space<vmem>>, vector<1x1x32xf32>
    %295 = vector.shape_cast %294 : vector<1x1x32xf32> to vector<1x32xf32>
    %cst_141 = arith.constant dense<0.000000e+00> : vector<16xf32>
    %296 = vector.multi_reduction <add>, %291, %cst_141 [1] : vector<16x32xf32> to vector<16xf32>
    %297 = vector.shape_cast %296 : vector<16xf32> to vector<16x1xf32>
    %cst_142 = arith.constant 3.200000e+01 : f32
    %298 = vector.broadcast %cst_142 : f32 to vector<16x1xf32>
    %299 = arith.divf %297, %298 : vector<16x1xf32>
    %300 = vector.broadcast %299 : vector<16x1xf32> to vector<16x32xf32>
    %301 = arith.subf %291, %300 : vector<16x32xf32>
    %302 = arith.mulf %301, %301 : vector<16x32xf32>
    %cst_143 = arith.constant dense<0.000000e+00> : vector<16xf32>
    %303 = vector.multi_reduction <add>, %302, %cst_143 [1] : vector<16x32xf32> to vector<16xf32>
    %304 = vector.shape_cast %303 : vector<16xf32> to vector<16x1xf32>
    %cst_144 = arith.constant 3.200000e+01 : f32
    %305 = vector.broadcast %cst_144 : f32 to vector<16x1xf32>
    %306 = arith.divf %304, %305 : vector<16x1xf32>
    %cst_145 = arith.constant 9.99999996E-13 : f32
    %307 = vector.broadcast %cst_145 : f32 to vector<16x1xf32>
    %308 = arith.addf %306, %307 : vector<16x1xf32>
    %309 = math.rsqrt %308 : vector<16x1xf32>
    %310 = vector.broadcast %309 : vector<16x1xf32> to vector<16x32xf32>
    %311 = arith.mulf %301, %310 : vector<16x32xf32>
    %312 = vector.broadcast %293 : vector<1x32xf32> to vector<16x32xf32>
    %313 = arith.mulf %311, %312 : vector<16x32xf32>
    %314 = vector.broadcast %295 : vector<1x32xf32> to vector<16x32xf32>
    %315 = arith.addf %313, %314 : vector<16x32xf32>
    %316 = vector.shape_cast %315 : vector<16x32xf32> to vector<2x8x32xf32>
    %cst_146 = arith.constant dense<0.000000e+00> : vector<2x32xf32>
    %317 = vector.multi_reduction <add>, %316, %cst_146 [1] : vector<2x8x32xf32> to vector<2x32xf32>
    %cst_147 = arith.constant 8.000000e+00 : f32
    %318 = vector.broadcast %cst_147 : f32 to vector<2x32xf32>
    %319 = arith.divf %317, %318 : vector<2x32xf32>
    %c0_148 = arith.constant 0 : index
    %c0_149 = arith.constant 0 : index
    %320 = vector.load %arg16[%c0_148, %c0_149] : memref<2x32xf32, #tpu.memory_space<vmem>>, vector<2x32xf32>
    tpu.vector_store %arg16[%c0_148, %c0_149], %319 {strides = array<i32>} : memref<2x32xf32, #tpu.memory_space<vmem>>, vector<2x32xf32>,
    return
  }
}

</mosaic_0001>

<bundles_post_ra>
// kernel: bert_feature_extractor.1
= control target key start
LH: loop header
LB: loop body
LE: loop exit
PB: predicated region body
PF: predicated region fallthrough
CT: control target
= control target key end

     0   :  { %s5336_s0 = inlined_call_operand.vmem [shape: f32[16,32], index: 0, kind: input, shape index: {}]   ;;  %s5337_s1 = inlined_call_operand.vmem [shape: f32[8,8,8], index: 1, kind: input, shape index: {}]   ;;  %s5338_s2 = inlined_call_operand.vmem [shape: f32[1,32], index: 2, kind: input, shape index: {}]   ;;  %s5339_s3 = inlined_call_operand.vmem [shape: f32[1,32], index: 3, kind: input, shape index: {}]   ;;  %s5340_s4 = inlined_call_operand.vmem [shape: f32[2,32,96], index: 4, kind: input, shape index: {}]   ;;  %s5341_s5 = inlined_call_operand.vmem [shape: f32[2,1,96], index: 5, kind: input, shape index: {}]   ;;  %s5342_s6 = inlined_call_operand.vmem [shape: f32[2,32,32], index: 6, kind: input, shape index: {}]   ;;  %s5343_s7 = inlined_call_operand.vmem [shape: f32[2,1,32], index: 7, kind: input, shape index: {}]   ;;  %s5344_s8 = inlined_call_operand.vmem [shape: f32[2,1,32], index: 8, kind: input, shape index: {}]   ;;  %s5345_s9 = inlined_call_operand.vmem [shape: f32[2,1,32], index: 9, kind: input, shape index: {}]   ;;  %s5346_s10 = inlined_call_operand.vmem [shape: f32[2,32,64], index: 10, kind: input, shape index: {}]   ;;  %s5347_s11 = inlined_call_operand.vmem [shape: f32[2,1,64], index: 11, kind: input, shape index: {}]   ;;  %s5348_s12 = inlined_call_operand.vmem [shape: f32[2,64,32], index: 12, kind: input, shape index: {}]   ;;  %s5349_s13 = inlined_call_operand.vmem [shape: f32[2,1,32], index: 13, kind: input, shape index: {}]   ;;  %s5350_s14 = inlined_call_operand.vmem [shape: f32[2,1,32], index: 14, kind: input, shape index: {}]   ;;  %s5351_s15 = inlined_call_operand.vmem [shape: f32[2,1,32], index: 15, kind: input, shape index: {}]   ;;  %s5352_s16 = inlined_call_operand.hbm [shape: f32[2,32], index: 16, kind: output, shape index: {}]  }
   0x1   :  { %5354 = sst [smem:[#allocation6_spill]] %s5336_s0 }
   0x2   :  { %s5355_s23 = sld [smem:[#allocation6_spill]]  ;;  %vm66_vm0 = vcmask 261120  }
   0x8   :  { %v62_v0 = vld [vmem:[%s5355_s23] sm:$0xff]  ;;  %v63_v1 = vld [vmem:[%s5355_s23 + $0x8] sm:$0xff] }
   0x9   :  { %21 = vsyncpa [#allocation4], 0  ;;  %v67_v2 = vsel %vm66_vm0, %v62_v0, 0.0  ;;  %v70_v3 = vsel %vm66_vm0, %v63_v1, 0.0  ;;  %v110_v14 = vld [vmem:[%s5340_s4] sm:$0xff]  ;;  %v111_v15 = vld [vmem:[%s5340_s4 + $0x8] sm:$0xff] }
   0xa   :  { %68 = vadd.xlane.f32.xlu0 %v67_v2  ;;  %v112_v16 = vld [vmem:[%s5340_s4 + $0x10] sm:$0xff]  ;;  %v4359_v17 = vpack.c.bf16 %v111_v15, %v110_v14  ;;  %v113_v18 = vld [vmem:[%s5340_s4 + $0x18] sm:$0xff]  ;;  %v3865_v27 = vld [vmem:[%s5338_s2] ss:$0 sm:$0xff]  ;;  %v4566_v37 = vmov 0.0   ;;  %vm4567_vm1 = vmmov 0  }
   0xb   :  { %v4363_v19 = vpack.c.bf16 %v113_v18, %v112_v16  ;;  %v3866_v29 = vld [vmem:[%s5339_s3] ss:$0 sm:$0xff]  ;;  %4116 = vmatprep.subr.mxu0 %v4566_v37  ;;  %4118 = vmatprep.mubr.msk.f32.mxu0 %vm4567_vm1, %v4566_v37  ;;  %s4568_s3 = smov 120   ;;  %s4569_s24 = smov 112   ;;  %vm218_vm2 = vcmask 64512   ;;  %v4809_v63 = vld [vmem:[%s5337_s1 + $0x8] sm:$0xff] }
   0xc   :  { %4360 = vmatprep.subr.bf16.mxu1 %v4359_v17  ;;  %v3867_v36 = vld [vmem:[%s5341_s5] ss:$0 sm:$0xff]  ;;  %s4570_s25 = smov 104   ;;  %s4571_s26 = smov 96   ;;  %vm1547_vm3 = vcmask 130112   ;;  %vm1558_vm4 = vcmask 195712  }
   0xd   :  { %4362 = vmatpush3.bf16.msra.mxu1 %v4359_v17  ;;  %v4802_v57 = vld [vmem:[%s5337_s1] sm:$0xff]  ;;  %s4573_s19 = smov 8   ;;  %s4574_s23 = smov 16   ;;  %vm1569_vm5 = vcmask 261312   ;;  %vm1837_vm6 = vcmask 523264   ;;  %vm3846_vm7 = vcmask 1041409  }
   0xe   :  { %71 = vadd.xlane.f32.xlu0 %v70_v3  ;;  %4364 = vmatprep.subr.bf16.mxu1 %v4363_v19  ;;  %v4829_v18 = vld [vmem:[%s5337_s1 + $0x20] sm:$0xff]  ;;  %s4575_s27 = smov 24   ;;  %vm3849_vm8 = vcmask 254976  }
  0x11   :  { %4366 = vmatpush3.bf16.msra.mxu1 %v4363_v19 }
  0x12   :  { %4106 = vmatprep.subr.mxu1 %v4566_v37 }
  0x97   :  { %v69_v4 = vpop.xlane.xlu0 %68 }
  0x98   :  { %v74_v5 = vmul.f32 0.03125, %v69_v4 }
  0x9a   :  { %v76_v6 = vsub.f32 %v62_v0, %v74_v5  ;;  %v4816_v5 = vld [vmem:[%s5337_s1 + $0x18] sm:$0xff] }
  0x9b   :  { %v72_v7 = vpop.xlane.xlu0 %71 }
  0x9c   :  { %v75_v8 = vmul.f32 0.03125, %v72_v7  ;;  %v78_v9 = vmul.f32 %v76_v6, %v76_v6 }
  0x9e   :  { %v77_v10 = vsub.f32 %v63_v1, %v75_v8  ;;  %v80_v11 = vsel %vm66_vm0, %v78_v9, 0.0 }
  0x9f   :  { %81 = vadd.xlane.f32.xlu1 %v80_v11  ;;  %v4821_v11 = vld [vmem:[%s5337_s1 + $0x10] sm:$0xff] }
  0xa0   :  { %v79_v12 = vmul.f32 %v77_v10, %v77_v10 }
  0xa2   :  { %v83_v13 = vsel %vm66_vm0, %v79_v12, 0.0 }
  0xa3   :  { %84 = vadd.xlane.f32.xlu1 %v83_v13 }
 0x12c   :  { %v82_v20 = vpop.xlane.xlu1 %81 }
 0x12d   :  { %v86_v21 = vmul.f32 0.03125, %v82_v20  ;;  %v4834_v20 = vld [vmem:[%s5337_s1 + $0x28] sm:$0xff] }
 0x12f   :  { %v88_v22 = vadd.f32 1e-12, %v86_v21 }
 0x130   :  { %v85_v23 = vpop.xlane.xlu1 %84 }
 0x131   :  { %4450 = vrsqrt.f32 %v88_v22  ;;  %v87_v24 = vmul.f32 0.03125, %v85_v23 }
 0x133   :  { %v89_v25 = vadd.f32 1e-12, %v87_v24 }
 0x135   :  { %4452 = vrsqrt.f32 %v89_v25 }
 0x13b   :  { %v4451_v26 = vpop.eup %4450 }
 0x13c   :  { %v92_v28 = vmul.f32 %v4451_v26, %v76_v6 }
 0x13e   :  { %v100_v30 = vmul.f32 %v3865_v27, %v92_v28  ;;  %v4841_v28 = vld [vmem:[%s5337_s1 + $0x30] sm:$0xff] }
 0x13f   :  { %v4453_v31 = vpop.eup %4452 }
 0x140   :  { %v93_v32 = vmul.f32 %v4453_v31, %v77_v10  ;;  %v4690_v33 = vadd.f32 %v3866_v29, %v100_v30  ;;  %v4847_v31 = vld [vmem:[%s5337_s1 + $0x38] sm:$0xff]  ;;  %s4572_s1 = smov 64  }
 0x142   :  { %v101_v34 = vmul.f32 %v3865_v27, %v93_v32  ;;  %4103 = vmatprep.mubr.msk.f32.mxu1 %vm66_vm0, %v4690_v33 }
 0x144   :  { %v4694_v35 = vadd.f32 %v3866_v29, %v101_v34 }
 0x146   :  { %4104 = vmatmul.mubr.msk.f32.vlgmr.msra.gmra.mrb[0].mxu1 %vm66_vm0, %v4694_v35 }
 0x147   :  { %4108 = vmatprep.mubr.msk.f32.mxu1 %vm4567_vm1, %v4566_v37 }
 0x219   :  { %v4105_v38 = vpop.f32.mrb[0].mxu1 }
 0x21a   :  { %v4707_v39 = vadd.f32 %v4105_v38, %v3867_v36  ;;  %v193_v40 = vpop.f32.mrb[1].mxu1 }
 0x21b   :  { %v4709_v41 = vadd.f32 %v3867_v36, %v193_v40 }
 0x21c   :  { %206 = vrot.lane.b32.xlu1 %v4707_v39, %s4568_s3 }
 0x21d   :  { %204 = vrot.lane.b32.xlu0 %v4709_v41, %s4568_s3 }
 0x220   :  { %208 = vrot.lane.b32.xlu1 %v4709_v41, %s4569_s24 }
 0x221   :  { %212 = vrot.lane.b32.xlu0 %v4709_v41, %s4570_s25 }
 0x224   :  { %210 = vrot.lane.b32.xlu1 %v4707_v39, %s4569_s24 }
 0x225   :  { %216 = vrot.lane.b32.xlu0 %v4709_v41, %s4571_s26 }
 0x228   :  { %214 = vrot.lane.b32.xlu1 %v4707_v39, %s4570_s25 }
 0x22c   :  { %293 = vrot.lane.b32.xlu1 %v4707_v39, %s4571_s26 }
 0x28e   :  { %v4727_v42 = vpop.permute.xlu1 %206 }
 0x28f   :  { %445 = vrot.lane.b32.xlu1 %v4727_v42, %s4571_s26  ;;  %v4731_v43 = vpop.permute.xlu0 %204 }
 0x290   :  { %369 = vrot.lane.b32.xlu0 %v4731_v43, %s4571_s26 }
 0x292   :  { %v4735_v44 = vpop.permute.xlu1 %208 }
 0x293   :  { %v4737_v45 = vpop.permute.xlu0 %212 }
 0x294   :  { %521 = vrot.lane.b32.xlu0 %v4735_v44, %s4571_s26 }
 0x296   :  { %v4741_v46 = vpop.permute.xlu1 %210 }
 0x297   :  { %597 = vrot.lane.b32.xlu1 %v4741_v46, %s4571_s26  ;;  %v217_v47 = vpop.permute.xlu0 %216 }
 0x298   :  { %673 = vrot.lane.b32.xlu0 %v4737_v45, %s4571_s26  ;;  %4107 = vmatpush3.xpose.msk.msra.mxu1 %vm218_vm2, %v217_v47 }
 0x299   :  { %4111 = vmatprep.subr.mxu1 %v4566_v37 }
 0x29a   :  { %v4749_v48 = vpop.permute.xlu1 %214 }
 0x29b   :  { %749 = vrot.lane.b32.xlu1 %v4749_v48, %s4571_s26  ;;  %4109 = vmatmul.mubr.msk.f32.vlgmr.msra.gmra.mrb[2].mxu1 %vm218_vm2, %v4709_v41 }
 0x29c   :  { %4113 = vmatprep.mubr.msk.f32.mxu1 %vm4567_vm1, %v4566_v37 }
 0x29e   :  { %v294_v49 = vpop.permute.xlu1 %293 }
 0x29f   :  { %4112 = vmatpush3.xpose.msk.msra.mxu1 %vm218_vm2, %v294_v49 }
 0x2a0   :  { %4121 = vmatprep.subr.mxu1 %v4566_v37 }
 0x2a2   :  { %4114 = vmatmul.mubr.msk.f32.vlgmr.msra.gmra.mrb[4].mxu1 %vm218_vm2, %v4707_v39 }
 0x2a3   :  { %4123 = vmatprep.mubr.msk.f32.mxu1 %vm4567_vm1, %v4566_v37 }
 0x301   :  { %v446_v50 = vpop.permute.xlu1 %445 }
 0x302   :  { %4122 = vmatpush3.xpose.msk.msra.mxu1 %vm218_vm2, %v446_v50  ;;  %v370_v51 = vpop.permute.xlu0 %369 }
 0x303   :  { %4117 = vmatpush3.xpose.msk.msra.mxu0 %vm218_vm2, %v370_v51  ;;  %4131 = vmatprep.subr.mxu1 %v4566_v37 }
 0x304   :  { %4126 = vmatprep.subr.mxu0 %v4566_v37 }
 0x305   :  { %4124 = vmatmul.mubr.msk.f32.vlgmr.msra.gmra.mrb[6].mxu1 %vm218_vm2, %v4727_v42 }
 0x306   :  { %4119 = vmatmul.mubr.msk.f32.vlgmr.msra.gmra.mrb[0].mxu0 %vm218_vm2, %v4731_v43  ;;  %v522_v52 = vpop.permute.xlu0 %521  ;;  %4133 = vmatprep.mubr.msk.f32.mxu1 %vm4567_vm1, %v4566_v37 }
 0x307   :  { %4127 = vmatpush3.xpose.msk.msra.mxu0 %vm218_vm2, %v522_v52  ;;  %4128 = vmatprep.mubr.msk.f32.mxu0 %vm4567_vm1, %v4566_v37 }
 0x308   :  { %4136 = vmatprep.subr.mxu0 %v4566_v37 }
 0x309   :  { %v598_v53 = vpop.permute.xlu1 %597 }
 0x30a   :  { %4129 = vmatmul.mubr.msk.f32.vlgmr.msra.gmra.mrb[2].mxu0 %vm218_vm2, %v4735_v44  ;;  %4132 = vmatpush3.xpose.msk.msra.mxu1 %vm218_vm2, %v598_v53  ;;  %v674_v54 = vpop.permute.xlu0 %673 }
 0x30b   :  { %4137 = vmatpush3.xpose.msk.msra.mxu0 %vm218_vm2, %v674_v54  ;;  %4138 = vmatprep.mubr.msk.f32.mxu0 %vm4567_vm1, %v4566_v37 }
 0x30c   :  { %4141 = vmatprep.subr.mxu1 %v4566_v37  ;;  %4146 = vmatprep.subr.mxu0 %v4566_v37 }
 0x30d   :  { %v750_v55 = vpop.permute.xlu1 %749  ;;  %4134 = vmatmul.mubr.msk.f32.vlgmr.msra.gmra.mrb[8].mxu1 %vm218_vm2, %v4741_v46 }
 0x30e   :  { %4139 = vmatmul.mubr.msk.f32.vlgmr.msra.gmra.mrb[4].mxu0 %vm218_vm2, %v4737_v45  ;;  %4142 = vmatpush3.xpose.msk.msra.mxu1 %vm218_vm2, %v750_v55 }
 0x30f   :  { %4143 = vmatprep.mubr.msk.f32.mxu1 %vm4567_vm1, %v4566_v37  ;;  %4151 = vmatprep.subr.mxu1 %v4566_v37 }
 0x310   :  { %4148 = vmatprep.mubr.msk.f32.mxu0 %vm4567_vm1, %v4566_v37 }
 0x311   :  { %4144 = vmatmul.mubr.msk.f32.vlgmr.msra.gmra.mrb[10].mxu1 %vm218_vm2, %v4749_v48 }
 0x312   :  { %4153 = vmatprep.mubr.msk.f32.mxu1 %vm4567_vm1, %v4566_v37 }
 0x36e   :  { %v289_v56 = vpop.f32.mrb[2].mxu1 }
 0x36f   :  { %v825_v58 = vmul.f32 0.35355338, %v289_v56  ;;  %v4110_v59 = vpop.f32.mrb[3].mxu1 }
 0x371   :  { %v833_v60 = vadd.f32 %v825_v58, %v4802_v57 }
 0x373   :  { %v841_v61 = vsel %vm218_vm2, %v833_v60, -inf }
 0x374   :  { %842 = vmax.xlane.f32.xlu0 %v841_v61 }
 0x375   :  { %v365_v62 = vpop.f32.mrb[4].mxu1 }
 0x376   :  { %v826_v0 = vmul.f32 0.35355338, %v365_v62  ;;  %v4115_v1 = vpop.f32.mrb[5].mxu1 }
 0x378   :  { %v834_v2 = vadd.f32 %v826_v0, %v4809_v63 }
 0x37a   :  { %v844_v3 = vsel %vm218_vm2, %v834_v2, -inf }
 0x37b   :  { %845 = vmax.xlane.f32.xlu1 %v844_v3 }
 0x3d8   :  { %v517_v4 = vpop.f32.mrb[6].mxu1 }
 0x3d9   :  { %v828_v6 = vmul.f32 0.35355338, %v517_v4  ;;  %v441_v7 = vpop.f32.mrb[0].mxu0  ;;  %v4125_v8 = vpop.f32.mrb[7].mxu1 }
 0x3da   :  { %v827_v9 = vmul.f32 0.35355338, %v441_v7  ;;  %v4120_v10 = vpop.f32.mrb[1].mxu0 }
 0x3db   :  { %v836_v12 = vadd.f32 %v828_v6, %v4816_v5 }
 0x3dc   :  { %v835_v15 = vadd.f32 %v827_v9, %v4821_v11 }
 0x3dd   :  { %v593_v13 = vpop.f32.mrb[2].mxu0  ;;  %v850_v14 = vsel %vm218_vm2, %v836_v12, -inf }
 0x3de   :  { %v829_v16 = vmul.f32 0.35355338, %v593_v13  ;;  %v4130_v17 = vpop.f32.mrb[3].mxu0  ;;  %851 = vmax.xlane.f32.xlu0 %v850_v14  ;;  %v847_v24 = vsel %vm218_vm2, %v835_v15, -inf }
 0x3e0   :  { %v669_v19 = vpop.f32.mrb[8].mxu1  ;;  %v837_v25 = vadd.f32 %v829_v16, %v4829_v18 }
 0x3e1   :  { %v830_v21 = vmul.f32 0.35355338, %v669_v19  ;;  %v4135_v22 = vpop.f32.mrb[9].mxu1  ;;  %v745_v23 = vpop.f32.mrb[4].mxu0 }
 0x3e2   :  { %v831_v26 = vmul.f32 0.35355338, %v745_v23  ;;  %v4140_v27 = vpop.f32.mrb[5].mxu0  ;;  %848 = vmax.xlane.f32.xlu0 %v847_v24  ;;  %v853_v38 = vsel %vm218_vm2, %v837_v25, -inf }
 0x3e3   :  { %v838_v29 = vadd.f32 %v830_v21, %v4834_v20 }
 0x3e4   :  { %v821_v30 = vpop.f32.mrb[10].mxu1  ;;  %v839_v40 = vadd.f32 %v831_v26, %v4841_v28 }
 0x3e5   :  { %v832_v32 = vmul.f32 0.35355338, %v821_v30  ;;  %v4145_v34 = vpop.f32.mrb[11].mxu1  ;;  %v856_v36 = vsel %vm218_vm2, %v838_v29, -inf }
 0x3e6   :  { %857 = vmax.xlane.f32.xlu1 %v856_v36  ;;  %854 = vmax.xlane.f32.xlu0 %v853_v38  ;;  %v859_v50 = vsel %vm218_vm2, %v839_v40, -inf }
 0x3e7   :  { %v840_v47 = vadd.f32 %v832_v32, %v4847_v31 }
 0x3e9   :  { %v862_v49 = vsel %vm218_vm2, %v840_v47, -inf }
 0x3ea   :  { %863 = vmax.xlane.f32.xlu1 %v862_v49  ;;  %860 = vmax.xlane.f32.xlu0 %v859_v50 }
 0x3fb   :  { %1005 = vrot.lane.b32.xlu1 %v4707_v39, %s4572_s1 }
 0x3ff   :  { %1081 = vrot.lane.b32.xlu1 %v4731_v43, %s4572_s1 }
 0x400   :  { %929 = vrot.lane.b32.xlu0 %v4709_v41, %s4572_s1 }
 0x401   :  { %v843_v51 = vpop.xlane.xlu0 %842 }
 0x402   :  { %v865_v52 = vsub.f32 %v833_v60, %v843_v51 }
 0x403   :  { %1157 = vrot.lane.b32.xlu1 %v4727_v42, %s4572_s1 }
 0x404   :  { %1233 = vrot.lane.b32.xlu0 %v4735_v44, %s4572_s1  ;;  %v873_v53 = vmul.f32 1.442695, %v865_v52 }
 0x406   :  { %4454 = vpow2.f32 %v873_v53 }
 0x407   :  { %1309 = vrot.lane.b32.xlu1 %v4741_v46, %s4572_s1 }
 0x408   :  { %v846_v54 = vpop.xlane.xlu1 %845 }
 0x409   :  { %v866_v39 = vsub.f32 %v834_v2, %v846_v54 }
 0x40b   :  { %v875_v55 = vmul.f32 1.442695, %v866_v39 }
 0x40d   :  { %4456 = vpow2.f32 %v875_v55 }
 0x410   :  { %v4867_v43 = vpop.eup %4454 }
 0x411   :  { %v889_v41 = vsel %vm218_vm2, %v4867_v43, 0.0 }
 0x417   :  { %v4871_v42 = vpop.eup %4456 }
 0x418   :  { %v892_v44 = vsel %vm218_vm2, %v4871_v42, 0.0 }
 0x423   :  { %890 = vadd.xlane.f32.xlu0 %v889_v41 }
 0x42b   :  { %893 = vadd.xlane.f32.xlu1 %v892_v44 }
 0x46b   :  { %v852_v46 = vpop.xlane.xlu0 %851 }
 0x46c   :  { %v868_v56 = vsub.f32 %v836_v12, %v852_v46 }
 0x46e   :  { %v879_v58 = vmul.f32 1.442695, %v868_v56 }
 0x46f   :  { %v849_v59 = vpop.xlane.xlu0 %848 }
 0x470   :  { %4458 = vpow2.f32 %v879_v58  ;;  %v867_v60 = vsub.f32 %v835_v15, %v849_v59 }
 0x472   :  { %v877_v61 = vmul.f32 1.442695, %v867_v60 }
 0x473   :  { %v858_v62 = vpop.xlane.xlu1 %857  ;;  %v855_v0 = vpop.xlane.xlu0 %854 }
 0x474   :  { %4460 = vpow2.f32 %v877_v61  ;;  %v870_v1 = vsub.f32 %v838_v29, %v858_v62  ;;  %v869_v2 = vsub.f32 %v837_v25, %v855_v0 }
 0x476   :  { %v883_v3 = vmul.f32 1.442695, %v870_v1  ;;  %v881_v4 = vmul.f32 1.442695, %v869_v2 }
 0x477   :  { %v864_v6 = vpop.xlane.xlu1 %863  ;;  %v861_v7 = vpop.xlane.xlu0 %860 }
 0x478   :  { %4462 = vpow2.f32 %v883_v3  ;;  %v872_v8 = vsub.f32 %v840_v47, %v864_v6  ;;  %v871_v9 = vsub.f32 %v839_v40, %v861_v7 }
 0x479   :  { %4464 = vpow2.f32 %v881_v4 }
 0x47a   :  { %v4459_v10 = vpop.eup %4458  ;;  %v887_v12 = vmul.f32 1.442695, %v872_v8  ;;  %v885_v13 = vmul.f32 1.442695, %v871_v9  ;;  %v1574_v8 = vld [vmem:[%s5342_s6] sm:$0xff]  ;;  %v1575_v9 = vld [vmem:[%s5342_s6 + $0x8] sm:$0xff] }
 0x47b   :  { %v1006_v14 = vpop.permute.xlu1 %1005  ;;  %v930_v16 = vpop.permute.xlu0 %929  ;;  %v898_v15 = vsel %vm218_vm2, %v4459_v10, 0.0 }
 0x47c   :  { %4466 = vpow2.f32 %v887_v12  ;;  %4152 = vmatpush3.msra.mxu1 %v1006_v14  ;;  %899 = vadd.xlane.f32.xlu1 %v898_v15  ;;  %v4367_v12 = vpack.c.bf16 %v1575_v9, %v1574_v8  ;;  %v1577_v14 = vld [vmem:[%s5342_s6 + $0x18] sm:$0xff] }
 0x47d   :  { %4468 = vpow2.f32 %v885_v13  ;;  %4147 = vmatpush3.msra.mxu0 %v930_v16  ;;  %4161 = vmatprep.subr.mxu1 %v4566_v37  ;;  %v1576_v13 = vld [vmem:[%s5342_s6 + $0x10] sm:$0xff] }
 0x47e   :  { %v4461_v17 = vpop.eup %4460  ;;  %4156 = vmatprep.subr.mxu0 %v4566_v37  ;;  %v4371_v16 = vpack.c.bf16 %v1577_v14, %v1576_v13  ;;  %v3898_v13 = vld [vmem:[%s5345_s9] ss:$0 sm:$0xff] }
 0x47f   :  { %v895_v19 = vsel %vm218_vm2, %v4461_v17, 0.0  ;;  %v1082_v30 = vpop.permute.xlu1 %1081  ;;  %v1234_v32 = vpop.permute.xlu0 %1233 }
 0x480   :  { %896 = vadd.xlane.f32.xlu0 %v895_v19 }
 0x482   :  { %v4463_v21 = vpop.eup %4462 }
 0x483   :  { %v4465_v22 = vpop.eup %4464  ;;  %v904_v23 = vsel %vm218_vm2, %v4463_v21, 0.0  ;;  %v1158_v34 = vpop.permute.xlu1 %1157 }
 0x484   :  { %905 = vadd.xlane.f32.xlu1 %v904_v23  ;;  %v901_v24 = vsel %vm218_vm2, %v4465_v22, 0.0 }
 0x485   :  { %902 = vadd.xlane.f32.xlu0 %v901_v24 }
 0x486   :  { %v4881_v25 = vpop.eup %4466 }
 0x487   :  { %v4883_v26 = vpop.eup %4468  ;;  %v910_v27 = vsel %vm218_vm2, %v4881_v25, 0.0  ;;  %v1310_v38 = vpop.permute.xlu1 %1309 }
 0x488   :  { %911 = vadd.xlane.f32.xlu1 %v910_v27  ;;  %v907_v29 = vsel %vm218_vm2, %v4883_v26, 0.0 }
 0x489   :  { %908 = vadd.xlane.f32.xlu0 %v907_v29 }
 0x499   :  { %1461 = vrot.lane.b32.xlu1 %v4749_v48, %s4572_s1 }
 0x49f   :  { %1385 = vrot.lane.b32.xlu0 %v4737_v45, %s4572_s1 }
 0x4b0   :  { %v891_v36 = vpop.xlane.xlu0 %890 }
 0x4b1   :  { %4470 = vrcp.f32 %v891_v36 }
 0x4b8   :  { %v894_v40 = vpop.xlane.xlu1 %893 }
 0x4b9   :  { %4472 = vrcp.f32 %v894_v40 }
 0x4bb   :  { %v4471_v47 = vpop.eup %4470 }
 0x4bc   :  { %v921_v49 = vmul.f32 %v4471_v47, %v4867_v43 }
 0x4be   :  { %4149 = vmatmul.mubr.msk.f32.vlgmr.msra.gmra.mrb[6].mxu0 %vm218_vm2, %v921_v49  ;;  %v3894_v49 = vld [vmem:[%s5343_s7] ss:$0 sm:$0xff] }
 0x4bf   :  { %4157 = vmatpush3.msra.mxu0 %v1082_v30  ;;  %4158 = vmatprep.mubr.msk.f32.mxu0 %vm4567_vm1, %v4566_v37 }
 0x4c0   :  { %4166 = vmatprep.subr.mxu0 %v4566_v37 }
 0x4c3   :  { %v4473_v45 = vpop.eup %4472 }
 0x4c4   :  { %v922_v48 = vmul.f32 %v4473_v45, %v4871_v42 }
 0x4c6   :  { %4154 = vmatmul.mubr.msk.f32.vlgmr.msra.gmra.mrb[12].mxu1 %vm218_vm2, %v922_v48 }
 0x4c7   :  { %4162 = vmatpush3.msra.mxu1 %v1158_v34  ;;  %4163 = vmatprep.mubr.msk.f32.mxu1 %vm4567_vm1, %v4566_v37 }
 0x4c8   :  { %4171 = vmatprep.subr.mxu1 %v4566_v37 }
 0x509   :  { %v900_v50 = vpop.xlane.xlu1 %899 }
 0x50a   :  { %4474 = vrcp.f32 %v900_v50 }
 0x50d   :  { %v897_v51 = vpop.xlane.xlu0 %896 }
 0x50e   :  { %4476 = vrcp.f32 %v897_v51 }
 0x511   :  { %v906_v52 = vpop.xlane.xlu1 %905 }
 0x512   :  { %4478 = vrcp.f32 %v906_v52  ;;  %v903_v53 = vpop.xlane.xlu0 %902 }
 0x513   :  { %4480 = vrcp.f32 %v903_v53 }
 0x514   :  { %v4475_v54 = vpop.eup %4474 }
 0x515   :  { %v924_v39 = vmul.f32 %v4475_v54, %v4459_v10  ;;  %v912_v55 = vpop.xlane.xlu1 %911 }
 0x516   :  { %4482 = vrcp.f32 %v912_v55  ;;  %v909_v43 = vpop.xlane.xlu0 %908 }
 0x517   :  { %4484 = vrcp.f32 %v909_v43  ;;  %4164 = vmatmul.mubr.msk.f32.vlgmr.msra.gmra.mrb[14].mxu1 %vm218_vm2, %v924_v39 }
 0x518   :  { %v4477_v41 = vpop.eup %4476  ;;  %4172 = vmatpush3.msra.mxu1 %v1310_v38  ;;  %4173 = vmatprep.mubr.msk.f32.mxu1 %vm4567_vm1, %v4566_v37 }
 0x519   :  { %v923_v42 = vmul.f32 %v4477_v41, %v4461_v17  ;;  %4181 = vmatprep.subr.mxu1 %v4566_v37  ;;  %v1462_v59 = vpop.permute.xlu1 %1461 }
 0x51a   :  { %v1386_v61 = vpop.permute.xlu0 %1385 }
 0x51b   :  { %4159 = vmatmul.mubr.msk.f32.vlgmr.msra.gmra.mrb[8].mxu0 %vm218_vm2, %v923_v42 }
 0x51c   :  { %v4479_v44 = vpop.eup %4478  ;;  %4167 = vmatpush3.msra.mxu0 %v1234_v32  ;;  %4168 = vmatprep.mubr.msk.f32.mxu0 %vm4567_vm1, %v4566_v37 }
 0x51d   :  { %v4481_v46 = vpop.eup %4480  ;;  %v926_v56 = vmul.f32 %v4479_v44, %v4463_v21  ;;  %4176 = vmatprep.subr.mxu0 %v4566_v37 }
 0x51e   :  { %v925_v58 = vmul.f32 %v4481_v46, %v4465_v22 }
 0x51f   :  { %4174 = vmatmul.mubr.msk.f32.vlgmr.msra.gmra.mrb[16].mxu1 %vm218_vm2, %v926_v56 }
 0x520   :  { %v4483_v60 = vpop.eup %4482  ;;  %4169 = vmatmul.mubr.msk.f32.vlgmr.msra.gmra.mrb[10].mxu0 %vm218_vm2, %v925_v58  ;;  %4182 = vmatpush3.msra.mxu1 %v1462_v59 }
 0x521   :  { %v4485_v62 = vpop.eup %4484  ;;  %v928_v0 = vmul.f32 %v4483_v60, %v4881_v25  ;;  %4177 = vmatpush3.msra.mxu0 %v1386_v61  ;;  %4178 = vmatprep.mubr.msk.f32.mxu0 %vm4567_vm1, %v4566_v37  ;;  %v1713_v60 = vld [vmem:[%s5346_s10 + $0x8] sm:$0xff] }
 0x522   :  { %v927_v1 = vmul.f32 %v4485_v62, %v4883_v26  ;;  %4183 = vmatprep.mubr.msk.f32.mxu1 %vm4567_vm1, %v4566_v37  ;;  %4368 = vmatprep.subr.bf16.mxu0 %v4367_v12  ;;  %v1714_v62 = vld [vmem:[%s5346_s10 + $0x10] sm:$0xff] }
 0x523   :  { %4184 = vmatmul.mubr.msk.f32.vlgmr.msra.gmra.mrb[18].mxu1 %vm218_vm2, %v928_v0  ;;  %v1715_v0 = vld [vmem:[%s5346_s10 + $0x18] sm:$0xff] }
 0x524   :  { %4179 = vmatmul.mubr.msk.f32.vlgmr.msra.gmra.mrb[12].mxu0 %vm218_vm2, %v927_v1  ;;  %v4379_v1 = vpack.c.bf16 %v1715_v0, %v1714_v62 }
 0x525   :  { %4370 = vmatpush3.bf16.msra.mxu0 %v4367_v12 }
 0x526   :  { %4372 = vmatprep.subr.bf16.mxu0 %v4371_v16 }
 0x529   :  { %4374 = vmatpush3.bf16.msra.mxu0 %v4371_v16 }
 0x591   :  { %v1001_v2 = vpop.f32.mrb[6].mxu0 }
 0x592   :  { %1537 = vst.msk [vmem:[#allocation2] sm:$0xff] %vm218_vm2, %v1001_v2  ;;  %v4150_v3 = vpop.f32.mrb[7].mxu0 }
 0x599   :  { %v1077_v4 = vpop.f32.mrb[12].mxu1 }
 0x59a   :  { %1538 = vst.msk [vmem:[#allocation2 + $0x8] sm:$0xff] %vm218_vm2, %v1077_v4  ;;  %v4155_v6 = vpop.f32.mrb[13].mxu1 }
 0x5ea   :  { %v1229_v7 = vpop.f32.mrb[14].mxu1 }
 0x5eb   :  { %1543 = vrot.lane.b32.xlu1 %v1229_v7, %s4573_s19  ;;  %v4165_v10 = vpop.f32.mrb[15].mxu1 }
 0x5ec   :  { %v3897_v10 = vld [vmem:[%s5344_s8] ss:$0 sm:$0xff] }
 0x5ee   :  { %v1153_v15 = vpop.f32.mrb[8].mxu0 }
 0x5ef   :  { %1541 = vrot.lane.b32.xlu0 %v1153_v15, %s4573_s19  ;;  %v4160_v17 = vpop.f32.mrb[9].mxu0 }
 0x5f2   :  { %v1381_v19 = vpop.f32.mrb[16].mxu1 }
 0x5f3   :  { %v1305_v21 = vpop.f32.mrb[10].mxu0  ;;  %1554 = vrot.lane.b32.xlu1 %v1381_v19, %s4574_s23  ;;  %v4175_v22 = vpop.f32.mrb[17].mxu1 }
 0x5f4   :  { %1552 = vrot.lane.b32.xlu0 %v1305_v21, %s4574_s23  ;;  %v4170_v23 = vpop.f32.mrb[11].mxu0  ;;  %v1822_v22 = vld [vmem:[%s5348_s12] sm:$0xff] }
 0x5f5   :  { %v1823_v23 = vld [vmem:[%s5348_s12 + $0x8] sm:$0xff] }
 0x5f6   :  { %v1533_v24 = vpop.f32.mrb[18].mxu1 }
 0x5f7   :  { %v1457_v25 = vpop.f32.mrb[12].mxu0  ;;  %1565 = vrot.lane.b32.xlu1 %v1533_v24, %s4575_s27  ;;  %v4185_v26 = vpop.f32.mrb[19].mxu1  ;;  %v4383_v24 = vpack.c.bf16 %v1823_v23, %v1822_v22  ;;  %v3908_v22 = vld [vmem:[%s5340_s4 + $0x28] sm:$0xff] }
 0x5f8   :  { %1563 = vrot.lane.b32.xlu0 %v1457_v25, %s4575_s27  ;;  %v4180_v27 = vpop.f32.mrb[13].mxu0  ;;  %v1824_v25 = vld [vmem:[%s5348_s12 + $0x10] sm:$0xff]  ;;  %v1825_v26 = vld [vmem:[%s5348_s12 + $0x18] sm:$0xff] }
 0x5f9   :  { %v4387_v27 = vpack.c.bf16 %v1825_v26, %v1824_v25  ;;  %4384 = vmatprep.subr.bf16.mxu0 %v4383_v24  ;;  %v3910_v25 = vld [vmem:[%s5340_s4 + $0x38] sm:$0xff] }
 0x65d   :  { %v1544_v29 = vpop.permute.xlu1 %1543 }
 0x65e   :  { %1549 = vst.msk [vmem:[#allocation2 + $0x8] sm:$0xff] %vm1547_vm3, %v1544_v29  ;;  %v1826_v29 = vld [vmem:[%s5348_s12 + $0x20] sm:$0xff] }
 0x661   :  { %v1542_v30 = vpop.permute.xlu0 %1541 }
 0x662   :  { %1548 = vst.msk [vmem:[#allocation2] sm:$0xff] %vm1547_vm3, %v1542_v30  ;;  %v1827_v30 = vld [vmem:[%s5348_s12 + $0x28] sm:$0xff] }
 0x665   :  { %v1555_v32 = vpop.permute.xlu1 %1554 }
 0x666   :  { %1560 = vst.msk [vmem:[#allocation2 + $0x8] sm:$0xff] %vm1558_vm4, %v1555_v32  ;;  %v1553_v34 = vpop.permute.xlu0 %1552  ;;  %v4391_v32 = vpack.c.bf16 %v1827_v30, %v1826_v29 }
 0x667   :  { %1559 = vst.msk [vmem:[#allocation2] sm:$0xff] %vm1558_vm4, %v1553_v34  ;;  %v1828_v34 = vld [vmem:[%s5348_s12 + $0x30] sm:$0xff] }
 0x669   :  { %v1566_v36 = vpop.permute.xlu1 %1565 }
 0x66a   :  { %1571 = vst.msk [vmem:[#allocation2 + $0x8] sm:$0xff] %vm1569_vm5, %v1566_v36  ;;  %v1564_v38 = vpop.permute.xlu0 %1563  ;;  %v1829_v36 = vld [vmem:[%s5348_s12 + $0x38] sm:$0xff] }
 0x66b   :  { %1570 = vst.msk [vmem:[#allocation2] sm:$0xff] %vm1569_vm5, %v1564_v38  ;;  %v4395_v38 = vpack.c.bf16 %v1829_v36, %v1828_v34 }
 0x671   :  { %v1573_v40 = vld [vmem:[#allocation2 + $0x8] sm:$0xff] }
 0x672   :  { %v1572_v47 = vld [vmem:[#allocation2] sm:$0xff] }
 0x673   :  { %4194 = vmatprep.mubr.msk.f32.mxu0 %vm66_vm0, %v1572_v47 }
 0x674   :  { %4195 = vmatmul.mubr.msk.f32.vlgmr.msra.gmra.mrb[14].mxu0 %vm66_vm0, %v1573_v40  ;;  %v3899_v40 = vld [vmem:[%s5347_s11] ss:$0 sm:$0xff] }
 0x675   :  { %4386 = vmatpush3.bf16.msra.mxu0 %v4383_v24  ;;  %v3909_v24 = vld [vmem:[%s5340_s4 + $0x30] sm:$0xff] }
 0x676   :  { %4388 = vmatprep.subr.bf16.mxu0 %v4387_v27  ;;  %v4403_v26 = vpack.c.bf16 %v3910_v25, %v3909_v24 }
 0x679   :  { %4390 = vmatpush3.bf16.msra.mxu0 %v4387_v27 }
 0x67a   :  { %4392 = vmatprep.subr.bf16.mxu0 %v4391_v32 }
 0x67d   :  { %4394 = vmatpush3.bf16.msra.mxu0 %v4391_v32 }
 0x67e   :  { %4396 = vmatprep.subr.bf16.mxu0 %v4395_v38 }
 0x681   :  { %4398 = vmatpush3.bf16.msra.mxu0 %v4395_v38 }
 0x682   :  { %4248 = vmatprep.subr.mxu0 %v4566_v37 }
 0x747   :  { %v4196_v45 = vpop.f32.mrb[14].mxu0 }
 0x748   :  { %v1663_v48 = vadd.f32 %v4196_v45, %v3894_v49  ;;  %v1657_v50 = vpop.f32.mrb[15].mxu0 }
 0x749   :  { %v1658_v51 = vadd.f32 %v3894_v49, %v1657_v50 }
 0x74a   :  { %v1667_v52 = vadd.f32 %v1663_v48, %v4694_v35 }
 0x74b   :  { %v1666_v53 = vadd.f32 %v1658_v51, %v4690_v33  ;;  %v1712_v33 = vld [vmem:[%s5346_s10] sm:$0xff] }
 0x74c   :  { %v1673_v54 = vsel %vm66_vm0, %v1667_v52, 0.0  ;;  %v4375_v61 = vpack.c.bf16 %v1713_v60, %v1712_v33 }
 0x74d   :  { %1674 = vadd.xlane.f32.xlu1 %v1673_v54  ;;  %v1670_v39 = vsel %vm66_vm0, %v1666_v53, 0.0 }
 0x74e   :  { %1671 = vadd.xlane.f32.xlu0 %v1670_v39  ;;  %4376 = vmatprep.subr.bf16.mxu1 %v4375_v61 }
 0x74f   :  { %4378 = vmatpush3.bf16.msra.mxu1 %v4375_v61  ;;  %v3902_v61 = vld [vmem:[%s5349_s13] ss:$0 sm:$0xff] }
 0x750   :  { %4380 = vmatprep.subr.bf16.mxu1 %v4379_v1 }
 0x753   :  { %4382 = vmatpush3.bf16.msra.mxu1 %v4379_v1 }
 0x7da   :  { %v1675_v55 = vpop.xlane.xlu1 %1674 }
 0x7db   :  { %v1677_v43 = vmul.f32 0.03125, %v1675_v55  ;;  %v1672_v41 = vpop.xlane.xlu0 %1671 }
 0x7dc   :  { %v1676_v42 = vmul.f32 0.03125, %v1672_v41 }
 0x7dd   :  { %v1679_v44 = vsub.f32 %v1667_v52, %v1677_v43 }
 0x7de   :  { %v1678_v46 = vsub.f32 %v1666_v53, %v1676_v42 }
 0x7df   :  { %v1681_v59 = vmul.f32 %v1679_v44, %v1679_v44 }
 0x7e0   :  { %v1680_v56 = vmul.f32 %v1678_v46, %v1678_v46 }
 0x7e1   :  { %v1685_v35 = vsel %vm66_vm0, %v1681_v59, 0.0 }
 0x7e2   :  { %v1682_v58 = vsel %vm66_vm0, %v1680_v56, 0.0 }
 0x7e3   :  { %1683 = vadd.xlane.f32.xlu0 %v1682_v58 }
 0x7e7   :  { %1686 = vadd.xlane.f32.xlu0 %v1685_v35 }
 0x870   :  { %v1684_v2 = vpop.xlane.xlu0 %1683 }
 0x871   :  { %v1688_v3 = vmul.f32 0.03125, %v1684_v2 }
 0x873   :  { %v1690_v4 = vadd.f32 1e-12, %v1688_v3 }
 0x874   :  { %v1687_v6 = vpop.xlane.xlu0 %1686 }
 0x875   :  { %4486 = vrsqrt.f32 %v1690_v4  ;;  %v1689_v7 = vmul.f32 0.03125, %v1687_v6 }
 0x877   :  { %v1691_v8 = vadd.f32 1e-12, %v1689_v7 }
 0x879   :  { %4488 = vrsqrt.f32 %v1691_v8 }
 0x87f   :  { %v4487_v9 = vpop.eup %4486 }
 0x880   :  { %v1694_v12 = vmul.f32 %v4487_v9, %v1678_v46 }
 0x882   :  { %v1702_v14 = vmul.f32 %v3897_v10, %v1694_v12 }
 0x883   :  { %v4489_v16 = vpop.eup %4488 }
 0x884   :  { %v1695_v15 = vmul.f32 %v4489_v16, %v1679_v44  ;;  %v1710_v17 = vadd.f32 %v3898_v13, %v1702_v14 }
 0x886   :  { %v1703_v19 = vmul.f32 %v3897_v10, %v1695_v15  ;;  %4205 = vmatprep.mubr.msk.f32.mxu1 %vm66_vm0, %v1710_v17 }
 0x888   :  { %v1711_v21 = vadd.f32 %v3898_v13, %v1703_v19 }
 0x88a   :  { %4206 = vmatmul.mubr.msk.f32.vlgmr.msra.gmra.mrb[20].mxu1 %vm66_vm0, %v1711_v21 }
 0x95d   :  { %v4207_v47 = vpop.f32.mrb[20].mxu1 }
 0x95e   :  { %v1801_v49 = vadd.f32 %v4207_v47, %v3899_v40  ;;  %v1795_v45 = vpop.f32.mrb[21].mxu1 }
 0x95f   :  { %v1796_v48 = vadd.f32 %v3899_v40, %v1795_v45  ;;  %v3905_v40 = vld [vmem:[%s5350_s14] ss:$0 sm:$0xff] }
 0x960   :  { %v1807_v50 = vmul.f32 0.044715, %v1801_v49  ;;  %v1805_v35 = vmul.f32 0.5, %v1801_v49 }
 0x961   :  { %v1806_v51 = vmul.f32 0.044715, %v1796_v48  ;;  %v1804_v58 = vmul.f32 0.5, %v1796_v48 }
 0x962   :  { %v1809_v52 = vmul.f32 %v1807_v50, %v1801_v49 }
 0x963   :  { %v1808_v53 = vmul.f32 %v1806_v51, %v1796_v48 }
 0x964   :  { %v1811_v54 = vmul.f32 %v1809_v52, %v1801_v49 }
 0x965   :  { %v1810_v39 = vmul.f32 %v1808_v53, %v1796_v48 }
 0x966   :  { %v1813_v55 = vadd.f32 %v1811_v54, %v1801_v49  ;;  %v3912_v54 = vld [vmem:[%s5341_s5 + $0x1] ss:$0 sm:$0xff] }
 0x967   :  { %v1812_v43 = vadd.f32 %v1810_v39, %v1796_v48  ;;  %v3906_v48 = vld [vmem:[%s5351_s15] ss:$0 sm:$0xff] }
 0x968   :  { %v1815_v41 = vmul.f32 0.7978846, %v1813_v55 }
 0x969   :  { %v1814_v42 = vmul.f32 0.7978846, %v1812_v43 }
 0x96a   :  { %4490 = vtanh.f32 %v1815_v41 }
 0x96b   :  { %4492 = vtanh.f32 %v1814_v42 }
 0x974   :  { %v4491_v44 = vpop.eup %4490 }
 0x975   :  { %v4493_v46 = vpop.eup %4492  ;;  %v1819_v56 = vadd.f32 1.0, %v4491_v44 }
 0x976   :  { %v1818_v59 = vadd.f32 1.0, %v4493_v46 }
 0x977   :  { %v1821_v60 = vmul.f32 %v1819_v56, %v1805_v35 }
 0x978   :  { %v1820_v33 = vmul.f32 %v1818_v59, %v1804_v58 }
 0x97a   :  { %4224 = vmatprep.mubr.msk.f32.mxu0 %vm1837_vm6, %v1820_v33 }
 0x97b   :  { %4225 = vmatmul.mubr.msk.f32.vlgmr.msra.gmra.mrb[16].mxu0 %vm1837_vm6, %v1821_v60 }
 0x97c   :  { %4250 = vmatprep.mubr.msk.f32.mxu0 %vm4567_vm1, %v4566_v37 }
 0xa4e   :  { %v4226_v62 = vpop.f32.mrb[16].mxu0 }
 0xa4f   :  { %v1916_v0 = vadd.f32 %v4226_v62, %v3902_v61  ;;  %v1910_v1 = vpop.f32.mrb[17].mxu0 }
 0xa50   :  { %v1911_v2 = vadd.f32 %v3902_v61, %v1910_v1 }
 0xa51   :  { %v1920_v3 = vadd.f32 %v1916_v0, %v1711_v21 }
 0xa52   :  { %v1919_v4 = vadd.f32 %v1911_v2, %v1710_v17  ;;  %v3907_v17 = vld [vmem:[%s5340_s4 + $0x20] sm:$0xff] }
 0xa53   :  { %v1926_v6 = vsel %vm66_vm0, %v1920_v3, 0.0  ;;  %v4399_v23 = vpack.c.bf16 %v3908_v22, %v3907_v17 }
 0xa54   :  { %1927 = vadd.xlane.f32.xlu1 %v1926_v6  ;;  %v1923_v7 = vsel %vm66_vm0, %v1919_v4, 0.0 }
 0xa55   :  { %1924 = vadd.xlane.f32.xlu0 %v1923_v7  ;;  %4400 = vmatprep.subr.bf16.mxu1 %v4399_v23 }
 0xa56   :  { %4402 = vmatpush3.bf16.msra.mxu1 %v4399_v23 }
 0xa57   :  { %4404 = vmatprep.subr.bf16.mxu1 %v4403_v26 }
 0xa5a   :  { %4406 = vmatpush3.bf16.msra.mxu1 %v4403_v26 }
 0xa5b   :  { %4238 = vmatprep.subr.mxu1 %v4566_v37 }
 0xae1   :  { %v1928_v8 = vpop.xlane.xlu1 %1927 }
 0xae2   :  { %v1930_v9 = vmul.f32 0.03125, %v1928_v8  ;;  %v1925_v10 = vpop.xlane.xlu0 %1924 }
 0xae3   :  { %v1929_v12 = vmul.f32 0.03125, %v1925_v10 }
 0xae4   :  { %v1932_v13 = vsub.f32 %v1920_v3, %v1930_v9 }
 0xae5   :  { %v1931_v14 = vsub.f32 %v1919_v4, %v1929_v12 }
 0xae6   :  { %v1934_v16 = vmul.f32 %v1932_v13, %v1932_v13 }
 0xae7   :  { %v1933_v15 = vmul.f32 %v1931_v14, %v1931_v14 }
 0xae8   :  { %v1938_v19 = vsel %vm66_vm0, %v1934_v16, 0.0 }
 0xae9   :  { %1939 = vadd.xlane.f32.xlu1 %v1938_v19  ;;  %v1935_v21 = vsel %vm66_vm0, %v1933_v15, 0.0 }
 0xaea   :  { %1936 = vadd.xlane.f32.xlu0 %v1935_v21 }
 0xb76   :  { %v1940_v27 = vpop.xlane.xlu1 %1939 }
 0xb77   :  { %v1942_v29 = vmul.f32 0.03125, %v1940_v27  ;;  %v1937_v30 = vpop.xlane.xlu0 %1936 }
 0xb78   :  { %v1941_v32 = vmul.f32 0.03125, %v1937_v30 }
 0xb79   :  { %v1944_v34 = vadd.f32 1e-12, %v1942_v29 }
 0xb7a   :  { %v1943_v36 = vadd.f32 1e-12, %v1941_v32 }
 0xb7b   :  { %4494 = vrsqrt.f32 %v1944_v34 }
 0xb7c   :  { %4496 = vrsqrt.f32 %v1943_v36 }
 0xb85   :  { %v4495_v38 = vpop.eup %4494 }
 0xb86   :  { %v4497_v47 = vpop.eup %4496  ;;  %v1948_v49 = vmul.f32 %v4495_v38, %v1932_v13 }
 0xb87   :  { %v1947_v45 = vmul.f32 %v4497_v47, %v1931_v14 }
 0xb88   :  { %v1956_v50 = vmul.f32 %v3905_v40, %v1948_v49 }
 0xb89   :  { %v1955_v51 = vmul.f32 %v3905_v40, %v1947_v45 }
 0xb8a   :  { %v5038_v53 = vadd.f32 %v3906_v48, %v1956_v50 }
 0xb8b   :  { %v5036_v52 = vadd.f32 %v3906_v48, %v1955_v51 }
 0xb8d   :  { %4235 = vmatprep.mubr.msk.f32.mxu1 %vm66_vm0, %v5036_v52 }
 0xb8e   :  { %4236 = vmatmul.mubr.msk.f32.vlgmr.msra.gmra.mrb[22].mxu1 %vm66_vm0, %v5038_v53 }
 0xb8f   :  { %4240 = vmatprep.mubr.msk.f32.mxu1 %vm4567_vm1, %v4566_v37 }
 0xc61   :  { %v4237_v39 = vpop.f32.mrb[22].mxu1 }
 0xc62   :  { %v5049_v55 = vadd.f32 %v4237_v39, %v3912_v54  ;;  %v2050_v43 = vpop.f32.mrb[23].mxu1 }
 0xc63   :  { %v5051_v41 = vadd.f32 %v3912_v54, %v2050_v43 }
 0xc64   :  { %2063 = vrot.lane.b32.xlu1 %v5049_v55, %s4568_s3 }
 0xc65   :  { %2061 = vrot.lane.b32.xlu0 %v5051_v41, %s4568_s3 }
 0xc68   :  { %2065 = vrot.lane.b32.xlu1 %v5051_v41, %s4569_s24 }
 0xc69   :  { %2069 = vrot.lane.b32.xlu0 %v5051_v41, %s4570_s25 }
 0xc6c   :  { %2067 = vrot.lane.b32.xlu1 %v5049_v55, %s4569_s24 }
 0xc6d   :  { %2073 = vrot.lane.b32.xlu0 %v5051_v41, %s4571_s26 }
 0xc70   :  { %2071 = vrot.lane.b32.xlu1 %v5049_v55, %s4570_s25 }
 0xc74   :  { %2149 = vrot.lane.b32.xlu1 %v5049_v55, %s4571_s26 }
 0xcd6   :  { %v5069_v42 = vpop.permute.xlu1 %2063 }
 0xcd7   :  { %2301 = vrot.lane.b32.xlu1 %v5069_v42, %s4571_s26  ;;  %v5073_v44 = vpop.permute.xlu0 %2061 }
 0xcd8   :  { %2225 = vrot.lane.b32.xlu0 %v5073_v44, %s4571_s26 }
 0xcda   :  { %v5077_v46 = vpop.permute.xlu1 %2065 }
 0xcdb   :  { %v5079_v56 = vpop.permute.xlu0 %2069 }
 0xcdc   :  { %2377 = vrot.lane.b32.xlu0 %v5077_v46, %s4571_s26 }
 0xcde   :  { %v5083_v58 = vpop.permute.xlu1 %2067 }
 0xcdf   :  { %2453 = vrot.lane.b32.xlu1 %v5083_v58, %s4571_s26  ;;  %v2074_v59 = vpop.permute.xlu0 %2073 }
 0xce0   :  { %2529 = vrot.lane.b32.xlu0 %v5079_v56, %s4571_s26  ;;  %4239 = vmatpush3.xpose.msk.msra.mxu1 %vm218_vm2, %v2074_v59 }
 0xce1   :  { %4243 = vmatprep.subr.mxu1 %v4566_v37 }
 0xce2   :  { %v5091_v35 = vpop.permute.xlu1 %2071 }
 0xce3   :  { %2605 = vrot.lane.b32.xlu1 %v5091_v35, %s4571_s26  ;;  %4241 = vmatmul.mubr.msk.f32.vlgmr.msra.gmra.mrb[24].mxu1 %vm218_vm2, %v5051_v41 }
 0xce4   :  { %4245 = vmatprep.mubr.msk.f32.mxu1 %vm4567_vm1, %v4566_v37 }
 0xce6   :  { %v2150_v33 = vpop.permute.xlu1 %2149 }
 0xce7   :  { %4244 = vmatpush3.xpose.msk.msra.mxu1 %vm218_vm2, %v2150_v33 }
 0xce8   :  { %4253 = vmatprep.subr.mxu1 %v4566_v37 }
 0xcea   :  { %4246 = vmatmul.mubr.msk.f32.vlgmr.msra.gmra.mrb[26].mxu1 %vm218_vm2, %v5049_v55 }
 0xceb   :  { %4255 = vmatprep.mubr.msk.f32.mxu1 %vm4567_vm1, %v4566_v37 }
 0xd49   :  { %v2302_v60 = vpop.permute.xlu1 %2301 }
 0xd4a   :  { %4254 = vmatpush3.xpose.msk.msra.mxu1 %vm218_vm2, %v2302_v60  ;;  %v2226_v61 = vpop.permute.xlu0 %2225 }
 0xd4b   :  { %4249 = vmatpush3.xpose.msk.msra.mxu0 %vm218_vm2, %v2226_v61  ;;  %4263 = vmatprep.subr.mxu1 %v4566_v37 }
 0xd4c   :  { %4258 = vmatprep.subr.mxu0 %v4566_v37 }
 0xd4d   :  { %4256 = vmatmul.mubr.msk.f32.vlgmr.msra.gmra.mrb[28].mxu1 %vm218_vm2, %v5069_v42 }
 0xd4e   :  { %4251 = vmatmul.mubr.msk.f32.vlgmr.msra.gmra.mrb[18].mxu0 %vm218_vm2, %v5073_v44  ;;  %v2378_v62 = vpop.permute.xlu0 %2377  ;;  %4265 = vmatprep.mubr.msk.f32.mxu1 %vm4567_vm1, %v4566_v37 }
 0xd4f   :  { %4259 = vmatpush3.xpose.msk.msra.mxu0 %vm218_vm2, %v2378_v62  ;;  %4260 = vmatprep.mubr.msk.f32.mxu0 %vm4567_vm1, %v4566_v37 }
 0xd50   :  { %4268 = vmatprep.subr.mxu0 %v4566_v37 }
 0xd51   :  { %v2454_v0 = vpop.permute.xlu1 %2453 }
 0xd52   :  { %4261 = vmatmul.mubr.msk.f32.vlgmr.msra.gmra.mrb[20].mxu0 %vm218_vm2, %v5077_v46  ;;  %4264 = vmatpush3.xpose.msk.msra.mxu1 %vm218_vm2, %v2454_v0  ;;  %v2530_v1 = vpop.permute.xlu0 %2529 }
 0xd53   :  { %4269 = vmatpush3.xpose.msk.msra.mxu0 %vm218_vm2, %v2530_v1  ;;  %4270 = vmatprep.mubr.msk.f32.mxu0 %vm4567_vm1, %v4566_v37 }
 0xd54   :  { %4273 = vmatprep.subr.mxu1 %v4566_v37  ;;  %4278 = vmatprep.subr.mxu0 %v4566_v37 }
 0xd55   :  { %v2606_v2 = vpop.permute.xlu1 %2605  ;;  %4266 = vmatmul.mubr.msk.f32.vlgmr.msra.gmra.mrb[30].mxu1 %vm218_vm2, %v5083_v58 }
 0xd56   :  { %4271 = vmatmul.mubr.msk.f32.vlgmr.msra.gmra.mrb[22].mxu0 %vm218_vm2, %v5079_v56  ;;  %4274 = vmatpush3.xpose.msk.msra.mxu1 %vm218_vm2, %v2606_v2 }
 0xd57   :  { %4275 = vmatprep.mubr.msk.f32.mxu1 %vm4567_vm1, %v4566_v37  ;;  %4283 = vmatprep.subr.mxu1 %v4566_v37 }
 0xd58   :  { %4280 = vmatprep.mubr.msk.f32.mxu0 %vm4567_vm1, %v4566_v37 }
 0xd59   :  { %4276 = vmatmul.mubr.msk.f32.vlgmr.msra.gmra.mrb[32].mxu1 %vm218_vm2, %v5091_v35 }
 0xd5a   :  { %4285 = vmatprep.mubr.msk.f32.mxu1 %vm4567_vm1, %v4566_v37 }
 0xdb6   :  { %v2145_v3 = vpop.f32.mrb[24].mxu1 }
 0xdb7   :  { %v2681_v4 = vmul.f32 0.35355338, %v2145_v3  ;;  %v4242_v6 = vpop.f32.mrb[25].mxu1 }
 0xdb9   :  { %v2689_v7 = vadd.f32 %v2681_v4, %v4802_v57 }
 0xdbb   :  { %v2697_v8 = vsel %vm218_vm2, %v2689_v7, -inf }
 0xdbc   :  { %2698 = vmax.xlane.f32.xlu0 %v2697_v8 }
 0xdbd   :  { %v2221_v9 = vpop.f32.mrb[26].mxu1 }
 0xdbe   :  { %v2682_v10 = vmul.f32 0.35355338, %v2221_v9  ;;  %v4247_v12 = vpop.f32.mrb[27].mxu1 }
 0xdc0   :  { %v2690_v13 = vadd.f32 %v2682_v10, %v4809_v63 }
 0xdc2   :  { %v2700_v14 = vsel %vm218_vm2, %v2690_v13, -inf }
 0xdc3   :  { %2701 = vmax.xlane.f32.xlu1 %v2700_v14 }
 0xe20   :  { %v2373_v16 = vpop.f32.mrb[28].mxu1 }
 0xe21   :  { %v2684_v15 = vmul.f32 0.35355338, %v2373_v16  ;;  %v2297_v19 = vpop.f32.mrb[18].mxu0  ;;  %v4257_v21 = vpop.f32.mrb[29].mxu1 }
 0xe22   :  { %v2683_v17 = vmul.f32 0.35355338, %v2297_v19  ;;  %v4252_v22 = vpop.f32.mrb[19].mxu0 }
 0xe23   :  { %v2692_v23 = vadd.f32 %v2684_v15, %v4816_v5 }
 0xe24   :  { %v2691_v25 = vadd.f32 %v2683_v17, %v4821_v11 }
 0xe25   :  { %v2449_v57 = vpop.f32.mrb[20].mxu0  ;;  %v2706_v24 = vsel %vm218_vm2, %v2692_v23, -inf }
 0xe26   :  { %v2685_v26 = vmul.f32 0.35355338, %v2449_v57  ;;  %2707 = vmax.xlane.f32.xlu0 %v2706_v24  ;;  %v4262_v27 = vpop.f32.mrb[21].mxu0  ;;  %v2703_v34 = vsel %vm218_vm2, %v2691_v25, -inf }
 0xe28   :  { %v2525_v63 = vpop.f32.mrb[30].mxu1  ;;  %v2693_v36 = vadd.f32 %v2685_v26, %v4829_v18 }
 0xe29   :  { %v2686_v29 = vmul.f32 0.35355338, %v2525_v63  ;;  %v4267_v30 = vpop.f32.mrb[31].mxu1  ;;  %v2601_v32 = vpop.f32.mrb[22].mxu0 }
 0xe2a   :  { %v2687_v38 = vmul.f32 0.35355338, %v2601_v32  ;;  %2704 = vmax.xlane.f32.xlu0 %v2703_v34  ;;  %v4272_v40 = vpop.f32.mrb[23].mxu0  ;;  %v2709_v48 = vsel %vm218_vm2, %v2693_v36, -inf }
 0xe2b   :  { %v2694_v5 = vadd.f32 %v2686_v29, %v4834_v20 }
 0xe2c   :  { %v2677_v47 = vpop.f32.mrb[32].mxu1  ;;  %v2695_v50 = vadd.f32 %v2687_v38, %v4841_v28 }
 0xe2d   :  { %v2688_v49 = vmul.f32 0.35355338, %v2677_v47  ;;  %v4277_v45 = vpop.f32.mrb[33].mxu1  ;;  %v2712_v11 = vsel %vm218_vm2, %v2694_v5, -inf }
 0xe2e   :  { %2713 = vmax.xlane.f32.xlu1 %v2712_v11  ;;  %2710 = vmax.xlane.f32.xlu0 %v2709_v48  ;;  %v2715_v54 = vsel %vm218_vm2, %v2695_v50, -inf }
 0xe2f   :  { %v2696_v51 = vadd.f32 %v2688_v49, %v4847_v31 }
 0xe31   :  { %v2718_v18 = vsel %vm218_vm2, %v2696_v51, -inf }
 0xe32   :  { %2719 = vmax.xlane.f32.xlu1 %v2718_v18  ;;  %2716 = vmax.xlane.f32.xlu0 %v2715_v54 }
 0xe43   :  { %2861 = vrot.lane.b32.xlu1 %v5049_v55, %s4572_s1 }
 0xe47   :  { %2937 = vrot.lane.b32.xlu1 %v5073_v44, %s4572_s1 }
 0xe48   :  { %2785 = vrot.lane.b32.xlu0 %v5051_v41, %s4572_s1 }
 0xe49   :  { %v2699_v20 = vpop.xlane.xlu0 %2698 }
 0xe4a   :  { %v2721_v28 = vsub.f32 %v2689_v7, %v2699_v20 }
 0xe4b   :  { %3013 = vrot.lane.b32.xlu1 %v5069_v42, %s4572_s1 }
 0xe4c   :  { %3089 = vrot.lane.b32.xlu0 %v5077_v46, %s4572_s1  ;;  %v2729_v31 = vmul.f32 1.442695, %v2721_v28 }
 0xe4e   :  { %4498 = vpow2.f32 %v2729_v31 }
 0xe4f   :  { %3165 = vrot.lane.b32.xlu1 %v5083_v58, %s4572_s1 }
 0xe50   :  { %v2702_v39 = vpop.xlane.xlu1 %2701 }
 0xe51   :  { %v2722_v55 = vsub.f32 %v2690_v13, %v2702_v39 }
 0xe53   :  { %v2731_v43 = vmul.f32 1.442695, %v2722_v55 }
 0xe55   :  { %4500 = vpow2.f32 %v2731_v43 }
 0xe58   :  { %v5169_v44 = vpop.eup %4498 }
 0xe59   :  { %v2745_v41 = vsel %vm218_vm2, %v5169_v44, 0.0 }
 0xe5f   :  { %v5173_v42 = vpop.eup %4500 }
 0xe60   :  { %v2748_v46 = vsel %vm218_vm2, %v5173_v42, 0.0 }
 0xe6b   :  { %2746 = vadd.xlane.f32.xlu0 %v2745_v41 }
 0xe73   :  { %2749 = vadd.xlane.f32.xlu1 %v2748_v46 }
 0xeb3   :  { %v2708_v58 = vpop.xlane.xlu0 %2707 }
 0xeb4   :  { %v2724_v59 = vsub.f32 %v2692_v23, %v2708_v58 }
 0xeb6   :  { %v2735_v33 = vmul.f32 1.442695, %v2724_v59 }
 0xeb7   :  { %v2705_v60 = vpop.xlane.xlu0 %2704 }
 0xeb8   :  { %4502 = vpow2.f32 %v2735_v33  ;;  %v2723_v61 = vsub.f32 %v2691_v25, %v2705_v60 }
 0xeba   :  { %v2733_v62 = vmul.f32 1.442695, %v2723_v61 }
 0xebb   :  { %v2714_v0 = vpop.xlane.xlu1 %2713  ;;  %v2711_v1 = vpop.xlane.xlu0 %2710 }
 0xebc   :  { %4504 = vpow2.f32 %v2733_v62  ;;  %v2726_v2 = vsub.f32 %v2694_v5, %v2714_v0  ;;  %v2725_v3 = vsub.f32 %v2693_v36, %v2711_v1  ;;  %v3939_v0 = vld [vmem:[%s5342_s6 + $0x20] sm:$0xff] }
 0xebe   :  { %v2739_v4 = vmul.f32 1.442695, %v2726_v2  ;;  %v2737_v6 = vmul.f32 1.442695, %v2725_v3  ;;  %v3941_v3 = vld [vmem:[%s5342_s6 + $0x30] sm:$0xff] }
 0xebf   :  { %v2720_v7 = vpop.xlane.xlu1 %2719  ;;  %v2717_v8 = vpop.xlane.xlu0 %2716 }
 0xec0   :  { %4506 = vpow2.f32 %v2739_v4  ;;  %v2728_v9 = vsub.f32 %v2696_v51, %v2720_v7  ;;  %v2727_v10 = vsub.f32 %v2695_v50, %v2717_v8  ;;  %v3942_v4 = vld [vmem:[%s5342_s6 + $0x38] sm:$0xff] }
 0xec1   :  { %4508 = vpow2.f32 %v2737_v6  ;;  %v4411_v6 = vpack.c.bf16 %v3942_v4, %v3941_v3  ;;  %v3961_v4 = vld [vmem:[%s5348_s12 + $0x50] sm:$0xff] }
 0xec2   :  { %v4503_v12 = vpop.eup %4502  ;;  %v2743_v13 = vmul.f32 1.442695, %v2728_v9  ;;  %v2741_v14 = vmul.f32 1.442695, %v2727_v10 }
 0xec3   :  { %v2862_v16 = vpop.permute.xlu1 %2861  ;;  %v2786_v15 = vpop.permute.xlu0 %2785  ;;  %v2754_v19 = vsel %vm218_vm2, %v4503_v12, 0.0 }
 0xec4   :  { %4510 = vpow2.f32 %v2743_v13  ;;  %4284 = vmatpush3.msra.mxu1 %v2862_v16  ;;  %2755 = vadd.xlane.f32.xlu1 %v2754_v19 }
 0xec5   :  { %4512 = vpow2.f32 %v2741_v14  ;;  %4279 = vmatpush3.msra.mxu0 %v2786_v15  ;;  %4293 = vmatprep.subr.mxu1 %v4566_v37 }
 0xec6   :  { %v4505_v21 = vpop.eup %4504  ;;  %4288 = vmatprep.subr.mxu0 %v4566_v37 }
 0xec7   :  { %v2751_v17 = vsel %vm218_vm2, %v4505_v21, 0.0  ;;  %v2938_v29 = vpop.permute.xlu1 %2937  ;;  %v3090_v30 = vpop.permute.xlu0 %3089 }
 0xec8   :  { %2752 = vadd.xlane.f32.xlu0 %v2751_v17 }
 0xeca   :  { %v4507_v22 = vpop.eup %4506 }
 0xecb   :  { %v4509_v23 = vpop.eup %4508  ;;  %v2760_v57 = vsel %vm218_vm2, %v4507_v22, 0.0  ;;  %v3014_v32 = vpop.permute.xlu1 %3013 }
 0xecc   :  { %2761 = vadd.xlane.f32.xlu1 %v2760_v57  ;;  %v2757_v24 = vsel %vm218_vm2, %v4509_v23, 0.0 }
 0xecd   :  { %2758 = vadd.xlane.f32.xlu0 %v2757_v24 }
 0xece   :  { %v5183_v25 = vpop.eup %4510 }
 0xecf   :  { %v5185_v26 = vpop.eup %4512  ;;  %v2766_v27 = vsel %vm218_vm2, %v5183_v25, 0.0  ;;  %v3166_v36 = vpop.permute.xlu1 %3165 }
 0xed0   :  { %2767 = vadd.xlane.f32.xlu1 %v2766_v27  ;;  %v2763_v63 = vsel %vm218_vm2, %v5185_v26, 0.0  ;;  %v3944_v27 = vld [vmem:[%s5343_s7 + $0x1] ss:$0 sm:$0xff] }
 0xed1   :  { %2764 = vadd.xlane.f32.xlu0 %v2763_v63 }
 0xee1   :  { %3317 = vrot.lane.b32.xlu1 %v5091_v35, %s4572_s1 }
 0xee7   :  { %3241 = vrot.lane.b32.xlu0 %v5079_v56, %s4572_s1 }
 0xef8   :  { %v2747_v34 = vpop.xlane.xlu0 %2746 }
 0xef9   :  { %4514 = vrcp.f32 %v2747_v34 }
 0xf00   :  { %v2750_v38 = vpop.xlane.xlu1 %2749 }
 0xf01   :  { %4516 = vrcp.f32 %v2750_v38 }
 0xf03   :  { %v4515_v40 = vpop.eup %4514 }
 0xf04   :  { %v2777_v5 = vmul.f32 %v4515_v40, %v5169_v44 }
 0xf06   :  { %4281 = vmatmul.mubr.msk.f32.vlgmr.msra.gmra.mrb[24].mxu0 %vm218_vm2, %v2777_v5 }
 0xf07   :  { %4289 = vmatpush3.msra.mxu0 %v2938_v29  ;;  %4290 = vmatprep.mubr.msk.f32.mxu0 %vm4567_vm1, %v4566_v37 }
 0xf08   :  { %4298 = vmatprep.subr.mxu0 %v4566_v37 }
 0xf0b   :  { %v4517_v56 = vpop.eup %4516 }
 0xf0c   :  { %v2778_v35 = vmul.f32 %v4517_v56, %v5173_v42 }
 0xf0e   :  { %4286 = vmatmul.mubr.msk.f32.vlgmr.msra.gmra.mrb[34].mxu1 %vm218_vm2, %v2778_v35 }
 0xf0f   :  { %4294 = vmatpush3.msra.mxu1 %v3014_v32  ;;  %4295 = vmatprep.mubr.msk.f32.mxu1 %vm4567_vm1, %v4566_v37 }
 0xf10   :  { %4303 = vmatprep.subr.mxu1 %v4566_v37 }
 0xf51   :  { %v2756_v47 = vpop.xlane.xlu1 %2755 }
 0xf52   :  { %4518 = vrcp.f32 %v2756_v47 }
 0xf55   :  { %v2753_v49 = vpop.xlane.xlu0 %2752 }
 0xf56   :  { %4520 = vrcp.f32 %v2753_v49 }
 0xf59   :  { %v2762_v45 = vpop.xlane.xlu1 %2761 }
 0xf5a   :  { %4522 = vrcp.f32 %v2762_v45  ;;  %v2759_v11 = vpop.xlane.xlu0 %2758 }
 0xf5b   :  { %4524 = vrcp.f32 %v2759_v11 }
 0xf5c   :  { %v4519_v48 = vpop.eup %4518 }
 0xf5d   :  { %v2780_v50 = vmul.f32 %v4519_v48, %v4503_v12  ;;  %v2768_v51 = vpop.xlane.xlu1 %2767 }
 0xf5e   :  { %4526 = vrcp.f32 %v2768_v51  ;;  %v2765_v18 = vpop.xlane.xlu0 %2764  ;;  %v3952_v51 = vld [vmem:[%s5346_s10 + $0x28] sm:$0xff] }
 0xf5f   :  { %4528 = vrcp.f32 %v2765_v18  ;;  %4296 = vmatmul.mubr.msk.f32.vlgmr.msra.gmra.mrb[36].mxu1 %vm218_vm2, %v2780_v50 }
 0xf60   :  { %v4521_v54 = vpop.eup %4520  ;;  %4304 = vmatpush3.msra.mxu1 %v3166_v36  ;;  %4305 = vmatprep.mubr.msk.f32.mxu1 %vm4567_vm1, %v4566_v37 }
 0xf61   :  { %v2779_v20 = vmul.f32 %v4521_v54, %v4505_v21  ;;  %4313 = vmatprep.subr.mxu1 %v4566_v37  ;;  %v3318_v43 = vpop.permute.xlu1 %3317  ;;  %v3953_v54 = vld [vmem:[%s5346_s10 + $0x30] sm:$0xff] }
 0xf62   :  { %v3242_v41 = vpop.permute.xlu0 %3241 }
 0xf63   :  { %4291 = vmatmul.mubr.msk.f32.vlgmr.msra.gmra.mrb[26].mxu0 %vm218_vm2, %v2779_v20  ;;  %v3954_v20 = vld [vmem:[%s5346_s10 + $0x38] sm:$0xff] }
 0xf64   :  { %v4523_v28 = vpop.eup %4522  ;;  %4299 = vmatpush3.msra.mxu0 %v3090_v30  ;;  %4300 = vmatprep.mubr.msk.f32.mxu0 %vm4567_vm1, %v4566_v37 }
 0xf65   :  { %v4525_v31 = vpop.eup %4524  ;;  %v2782_v39 = vmul.f32 %v4523_v28, %v4507_v22  ;;  %4308 = vmatprep.subr.mxu0 %v4566_v37  ;;  %v4419_v28 = vpack.c.bf16 %v3954_v20, %v3953_v54 }
 0xf66   :  { %v2781_v55 = vmul.f32 %v4525_v31, %v4509_v23 }
 0xf67   :  { %4306 = vmatmul.mubr.msk.f32.vlgmr.msra.gmra.mrb[38].mxu1 %vm218_vm2, %v2782_v39 }
 0xf68   :  { %v4527_v44 = vpop.eup %4526  ;;  %4301 = vmatmul.mubr.msk.f32.vlgmr.msra.gmra.mrb[28].mxu0 %vm218_vm2, %v2781_v55  ;;  %4314 = vmatpush3.msra.mxu1 %v3318_v43 }
 0xf69   :  { %v4529_v42 = vpop.eup %4528  ;;  %v2784_v46 = vmul.f32 %v4527_v44, %v5183_v25  ;;  %4309 = vmatpush3.msra.mxu0 %v3242_v41  ;;  %4310 = vmatprep.mubr.msk.f32.mxu0 %vm4567_vm1, %v4566_v37 }
 0xf6a   :  { %v2783_v58 = vmul.f32 %v4529_v42, %v5185_v26  ;;  %4315 = vmatprep.mubr.msk.f32.mxu1 %vm4567_vm1, %v4566_v37  ;;  %v3940_v37 = vld [vmem:[%s5342_s6 + $0x28] sm:$0xff] }
 0xf6b   :  { %4316 = vmatmul.mubr.msk.f32.vlgmr.msra.gmra.mrb[40].mxu1 %vm218_vm2, %v2784_v46  ;;  %v4407_v2 = vpack.c.bf16 %v3940_v37, %v3939_v0  ;;  %v3949_v46 = vld [vmem:[%s5344_s8 + $0x1] ss:$0 sm:$0xff] }
 0xf6c   :  { %4311 = vmatmul.mubr.msk.f32.vlgmr.msra.gmra.mrb[30].mxu0 %vm218_vm2, %v2783_v58 }
 0xf6d   :  { %4408 = vmatprep.subr.bf16.mxu0 %v4407_v2 }
 0xf6e   :  { %4410 = vmatpush3.bf16.msra.mxu0 %v4407_v2  ;;  %v3960_v2 = vld [vmem:[%s5348_s12 + $0x48] sm:$0xff] }
 0xf6f   :  { %4412 = vmatprep.subr.bf16.mxu0 %v4411_v6 }
 0xf72   :  { %4414 = vmatpush3.bf16.msra.mxu0 %v4411_v6  ;;  %v3962_v6 = vld [vmem:[%s5348_s12 + $0x58] sm:$0xff] }
 0xfd9   :  { %v2857_v59 = vpop.f32.mrb[24].mxu0 }
 0xfda   :  { %3393 = vst.msk [vmem:[#allocation2] sm:$0xff] %vm218_vm2, %v2857_v59  ;;  %v4282_v33 = vpop.f32.mrb[25].mxu0  ;;  %v3950_v59 = vld [vmem:[%s5345_s9 + $0x1] ss:$0 sm:$0xff] }
 0xfe1   :  { %v2933_v60 = vpop.f32.mrb[34].mxu1 }
 0xfe2   :  { %3394 = vst.msk [vmem:[#allocation2 + $0x8] sm:$0xff] %vm218_vm2, %v2933_v60  ;;  %v4287_v61 = vpop.f32.mrb[35].mxu1 }
0x1032   :  { %v3085_v62 = vpop.f32.mrb[36].mxu1 }
0x1033   :  { %3399 = vrot.lane.b32.xlu1 %v3085_v62, %s4573_s19  ;;  %v4297_v1 = vpop.f32.mrb[37].mxu1 }
0x1034   :  { %v3959_v1 = vld [vmem:[%s5348_s12 + $0x40] sm:$0xff] }
0x1035   :  { %v4423_v3 = vpack.c.bf16 %v3960_v2, %v3959_v1  ;;  %v3974_v2 = vld [vmem:[%s5351_s15 + $0x1] ss:$0 sm:$0xff] }
0x1036   :  { %v3009_v7 = vpop.f32.mrb[26].mxu0 }
0x1037   :  { %3397 = vrot.lane.b32.xlu0 %v3009_v7, %s4573_s19  ;;  %v4292_v8 = vpop.f32.mrb[27].mxu0  ;;  %v4427_v7 = vpack.c.bf16 %v3962_v6, %v3961_v4  ;;  %4424 = vmatprep.subr.bf16.mxu0 %v4423_v3 }
0x1038   :  { %v3963_v8 = vld [vmem:[%s5348_s12 + $0x60] sm:$0xff] }
0x103a   :  { %v3237_v9 = vpop.f32.mrb[38].mxu1 }
0x103b   :  { %v3161_v10 = vpop.f32.mrb[28].mxu0  ;;  %3409 = vrot.lane.b32.xlu1 %v3237_v9, %s4574_s23  ;;  %v4307_v12 = vpop.f32.mrb[39].mxu1  ;;  %v3964_v9 = vld [vmem:[%s5348_s12 + $0x68] sm:$0xff] }
0x103c   :  { %3407 = vrot.lane.b32.xlu0 %v3161_v10, %s4574_s23  ;;  %v4302_v13 = vpop.f32.mrb[29].mxu0  ;;  %v4431_v10 = vpack.c.bf16 %v3964_v9, %v3963_v8  ;;  %v3965_v12 = vld [vmem:[%s5348_s12 + $0x70] sm:$0xff] }
0x103d   :  { %v3966_v13 = vld [vmem:[%s5348_s12 + $0x78] sm:$0xff] }
0x103e   :  { %v3389_v14 = vpop.f32.mrb[40].mxu1 }
0x103f   :  { %v3313_v16 = vpop.f32.mrb[30].mxu0  ;;  %3419 = vrot.lane.b32.xlu1 %v3389_v14, %s4575_s27  ;;  %v4317_v15 = vpop.f32.mrb[41].mxu1  ;;  %v4435_v14 = vpack.c.bf16 %v3966_v13, %v3965_v12 }
0x1040   :  { %3417 = vrot.lane.b32.xlu0 %v3313_v16, %s4575_s27  ;;  %v4312_v19 = vpop.f32.mrb[31].mxu0  ;;  %v3956_v16 = vld [vmem:[%s5347_s11 + $0x1] ss:$0 sm:$0xff] }
0x10a5   :  { %v3400_v21 = vpop.permute.xlu1 %3399 }
0x10a6   :  { %3404 = vst.msk [vmem:[#allocation2 + $0x8] sm:$0xff] %vm1547_vm3, %v3400_v21 }
0x10a9   :  { %v3398_v17 = vpop.permute.xlu0 %3397 }
0x10aa   :  { %3403 = vst.msk [vmem:[#allocation2] sm:$0xff] %vm1547_vm3, %v3398_v17 }
0x10ad   :  { %v3410_v22 = vpop.permute.xlu1 %3409 }
0x10ae   :  { %3414 = vst.msk [vmem:[#allocation2 + $0x8] sm:$0xff] %vm1558_vm4, %v3410_v22  ;;  %v3408_v23 = vpop.permute.xlu0 %3407 }
0x10af   :  { %3413 = vst.msk [vmem:[#allocation2] sm:$0xff] %vm1558_vm4, %v3408_v23 }
0x10b1   :  { %v3420_v57 = vpop.permute.xlu1 %3419 }
0x10b2   :  { %3424 = vst.msk [vmem:[#allocation2 + $0x8] sm:$0xff] %vm1569_vm5, %v3420_v57  ;;  %v3418_v24 = vpop.permute.xlu0 %3417 }
0x10b3   :  { %3423 = vst.msk [vmem:[#allocation2] sm:$0xff] %vm1569_vm5, %v3418_v24 }
0x10b9   :  { %v3426_v25 = vld [vmem:[#allocation2 + $0x8] sm:$0xff] }
0x10ba   :  { %v3425_v26 = vld [vmem:[#allocation2] sm:$0xff] }
0x10bb   :  { %4326 = vmatprep.mubr.msk.f32.mxu0 %vm66_vm0, %v3425_v26 }
0x10bc   :  { %4327 = vmatmul.mubr.msk.f32.vlgmr.msra.gmra.mrb[32].mxu0 %vm66_vm0, %v3426_v25 }
0x10bd   :  { %4426 = vmatpush3.bf16.msra.mxu0 %v4423_v3 }
0x10be   :  { %4428 = vmatprep.subr.bf16.mxu0 %v4427_v7 }
0x10c1   :  { %4430 = vmatpush3.bf16.msra.mxu0 %v4427_v7 }
0x10c2   :  { %4432 = vmatprep.subr.bf16.mxu0 %v4431_v10 }
0x10c5   :  { %4434 = vmatpush3.bf16.msra.mxu0 %v4431_v10 }
0x10c6   :  { %4436 = vmatprep.subr.bf16.mxu0 %v4435_v14 }
0x10c9   :  { %4438 = vmatpush3.bf16.msra.mxu0 %v4435_v14 }
0x118f   :  { %v4328_v63 = vpop.f32.mrb[32].mxu0 }
0x1190   :  { %v3518_v29 = vadd.f32 %v4328_v63, %v3944_v27  ;;  %v3512_v30 = vpop.f32.mrb[33].mxu0 }
0x1191   :  { %v3513_v32 = vadd.f32 %v3944_v27, %v3512_v30 }
0x1192   :  { %v3522_v34 = vadd.f32 %v3518_v29, %v5038_v53 }
0x1193   :  { %v3521_v36 = vadd.f32 %v3513_v32, %v5036_v52  ;;  %v3951_v52 = vld [vmem:[%s5346_s10 + $0x20] sm:$0xff] }
0x1194   :  { %v3530_v38 = vsel %vm66_vm0, %v3522_v34, 0.0  ;;  %v4415_v18 = vpack.c.bf16 %v3952_v51, %v3951_v52 }
0x1195   :  { %3531 = vadd.xlane.f32.xlu1 %v3530_v38  ;;  %v3527_v40 = vsel %vm66_vm0, %v3521_v36, 0.0 }
0x1196   :  { %3528 = vadd.xlane.f32.xlu0 %v3527_v40  ;;  %4416 = vmatprep.subr.bf16.mxu1 %v4415_v18 }
0x1197   :  { %4418 = vmatpush3.bf16.msra.mxu1 %v4415_v18 }
0x1198   :  { %4420 = vmatprep.subr.bf16.mxu1 %v4419_v28 }
0x119b   :  { %4422 = vmatpush3.bf16.msra.mxu1 %v4419_v28 }
0x1222   :  { %v3532_v5 = vpop.xlane.xlu1 %3531 }
0x1223   :  { %v3534_v56 = vmul.f32 0.03125, %v3532_v5  ;;  %v3529_v35 = vpop.xlane.xlu0 %3528 }
0x1224   :  { %v3533_v47 = vmul.f32 0.03125, %v3529_v35 }
0x1225   :  { %v3536_v49 = vsub.f32 %v3522_v34, %v3534_v56 }
0x1226   :  { %v3535_v45 = vsub.f32 %v3521_v36, %v3533_v47  ;;  %v3968_v47 = vld [vmem:[%s5349_s13 + $0x1] ss:$0 sm:$0xff] }
0x1227   :  { %v3538_v50 = vmul.f32 %v3536_v49, %v3536_v49 }
0x1228   :  { %v3537_v11 = vmul.f32 %v3535_v45, %v3535_v45 }
0x1229   :  { %v3542_v53 = vsel %vm66_vm0, %v3538_v50, 0.0 }
0x122a   :  { %v3539_v48 = vsel %vm66_vm0, %v3537_v11, 0.0 }
0x122b   :  { %3540 = vadd.xlane.f32.xlu0 %v3539_v48 }
0x122f   :  { %3543 = vadd.xlane.f32.xlu0 %v3542_v53 }
0x12b8   :  { %v3541_v31 = vpop.xlane.xlu0 %3540 }
0x12b9   :  { %v3545_v39 = vmul.f32 0.03125, %v3541_v31 }
0x12bb   :  { %v3547_v55 = vadd.f32 1e-12, %v3545_v39 }
0x12bc   :  { %v3544_v43 = vpop.xlane.xlu0 %3543 }
0x12bd   :  { %4530 = vrsqrt.f32 %v3547_v55  ;;  %v3546_v44 = vmul.f32 0.03125, %v3544_v43 }
0x12bf   :  { %v3548_v41 = vadd.f32 1e-12, %v3546_v44 }
0x12c1   :  { %4532 = vrsqrt.f32 %v3548_v41 }
0x12c7   :  { %v4531_v42 = vpop.eup %4530 }
0x12c8   :  { %v3551_v58 = vmul.f32 %v4531_v42, %v3535_v45 }
0x12ca   :  { %v3559_v33 = vmul.f32 %v3949_v46, %v3551_v58 }
0x12cb   :  { %v4533_v60 = vpop.eup %4532 }
0x12cc   :  { %v3552_v61 = vmul.f32 %v4533_v60, %v3536_v49  ;;  %v3567_v62 = vadd.f32 %v3950_v59, %v3559_v33 }
0x12ce   :  { %v3560_v0 = vmul.f32 %v3949_v46, %v3552_v61  ;;  %4337 = vmatprep.mubr.msk.f32.mxu1 %vm66_vm0, %v3567_v62 }
0x12d0   :  { %v3568_v37 = vadd.f32 %v3950_v59, %v3560_v0 }
0x12d2   :  { %4338 = vmatmul.mubr.msk.f32.vlgmr.msra.gmra.mrb[42].mxu1 %vm66_vm0, %v3568_v37 }
0x13a5   :  { %v4339_v15 = vpop.f32.mrb[42].mxu1 }
0x13a6   :  { %v3660_v19 = vadd.f32 %v4339_v15, %v3956_v16  ;;  %v3654_v21 = vpop.f32.mrb[43].mxu1 }
0x13a7   :  { %v3655_v17 = vadd.f32 %v3956_v16, %v3654_v21 }
0x13a8   :  { %v3666_v22 = vmul.f32 0.044715, %v3660_v19  ;;  %v3664_v5 = vmul.f32 0.5, %v3660_v19 }
0x13a9   :  { %v3665_v23 = vmul.f32 0.044715, %v3655_v17  ;;  %v3663_v38 = vmul.f32 0.5, %v3655_v17 }
0x13aa   :  { %v3668_v57 = vmul.f32 %v3666_v22, %v3660_v19 }
0x13ab   :  { %v3667_v24 = vmul.f32 %v3665_v23, %v3655_v17 }
0x13ac   :  { %v3670_v25 = vmul.f32 %v3668_v57, %v3660_v19 }
0x13ad   :  { %v3669_v26 = vmul.f32 %v3667_v24, %v3655_v17 }
0x13ae   :  { %v3672_v27 = vadd.f32 %v3670_v25, %v3660_v19 }
0x13af   :  { %v3671_v63 = vadd.f32 %v3669_v26, %v3655_v17 }
0x13b0   :  { %v3674_v29 = vmul.f32 0.7978846, %v3672_v27 }
0x13b1   :  { %v3673_v30 = vmul.f32 0.7978846, %v3671_v63 }
0x13b2   :  { %4534 = vtanh.f32 %v3674_v29 }
0x13b3   :  { %4536 = vtanh.f32 %v3673_v30 }
0x13bc   :  { %v4535_v32 = vpop.eup %4534 }
0x13bd   :  { %v4537_v34 = vpop.eup %4536  ;;  %v3678_v36 = vadd.f32 1.0, %v4535_v32 }
0x13be   :  { %v3677_v40 = vadd.f32 1.0, %v4537_v34 }
0x13bf   :  { %v3680_v35 = vmul.f32 %v3678_v36, %v3664_v5 }
0x13c0   :  { %v3679_v56 = vmul.f32 %v3677_v40, %v3663_v38 }
0x13c2   :  { %4356 = vmatprep.mubr.msk.f32.mxu0 %vm1837_vm6, %v3679_v56 }
0x13c3   :  { %4357 = vmatmul.mubr.msk.f32.vlgmr.msra.gmra.mrb[34].mxu0 %vm1837_vm6, %v3680_v35 }
0x1496   :  { %v4358_v49 = vpop.f32.mrb[34].mxu0 }
0x1497   :  { %v3776_v45 = vadd.f32 %v4358_v49, %v3968_v47  ;;  %v3770_v11 = vpop.f32.mrb[35].mxu0 }
0x1498   :  { %v3771_v48 = vadd.f32 %v3968_v47, %v3770_v11 }
0x1499   :  { %v3780_v50 = vadd.f32 %v3776_v45, %v3568_v37 }
0x149a   :  { %v3779_v53 = vadd.f32 %v3771_v48, %v3567_v62  ;;  %v3973_v62 = vld [vmem:[%s5350_s14 + $0x1] ss:$0 sm:$0xff]  ;;  %s4576_s14 = smov [#allocation3]  }
0x149b   :  { %v3788_v52 = vsel %vm66_vm0, %v3780_v50, 0.0  ;;  %s3857_s15 = sshll.u32 %s4576_s14, 4  ;;  %s3858_s15 = int_to_ptr.vmem [resolvable:$true] %s3857_s15 }
0x149c   :  { %3789 = vadd.xlane.f32.xlu1 %v3788_v52  ;;  %v3785_v51 = vsel %vm66_vm0, %v3779_v53, 0.0  ;;  %s4542_s4 = scalar_lea.vmem %s3858_s15, 32  ;;  %p4547_p1 = scmp.lt.s32.totalorder %s3858_s15, %s3858_s15 }
0x149d   :  { %3786 = vadd.xlane.f32.xlu0 %v3785_v51  ;;  %p4543_p0 = scmp.ne.s32.totalorder %s3858_s15, %s4542_s4  ;;  %p4548_p2 = scmp.lt.s32.totalorder %s4542_s4, %s4542_s4 }
0x149f   :  { %p4549_p3 = por %p4548_p2, %p4547_p1 }
0x14a1   :  { %p4550_p4 = pnand %p4549_p3, %p4543_p0 }
0x1529   :  { %v3790_v18 = vpop.xlane.xlu1 %3789 }
0x152a   :  { %v3792_v54 = vmul.f32 0.03125, %v3790_v18  ;;  %v3787_v20 = vpop.xlane.xlu0 %3786 }
0x152b   :  { %v3791_v28 = vmul.f32 0.03125, %v3787_v20 }
0x152c   :  { %v3794_v31 = vsub.f32 %v3780_v50, %v3792_v54 }
0x152d   :  { %v3793_v39 = vsub.f32 %v3779_v53, %v3791_v28 }
0x152e   :  { %v3796_v55 = vmul.f32 %v3794_v31, %v3794_v31 }
0x152f   :  { %v3795_v43 = vmul.f32 %v3793_v39, %v3793_v39 }
0x1530   :  { %v3800_v44 = vsel %vm66_vm0, %v3796_v55, 0.0 }
0x1531   :  { %3801 = vadd.xlane.f32.xlu1 %v3800_v44  ;;  %v3797_v41 = vsel %vm66_vm0, %v3795_v43, 0.0 }
0x1532   :  { %3798 = vadd.xlane.f32.xlu0 %v3797_v41 }
0x15be   :  { %v3802_v42 = vpop.xlane.xlu1 %3801 }
0x15bf   :  { %v3804_v46 = vmul.f32 0.03125, %v3802_v42  ;;  %v3799_v58 = vpop.xlane.xlu0 %3798 }
0x15c0   :  { %v3803_v59 = vmul.f32 0.03125, %v3799_v58 }
0x15c1   :  { %v3806_v33 = vadd.f32 1e-12, %v3804_v46 }
0x15c2   :  { %v3805_v60 = vadd.f32 1e-12, %v3803_v59 }
0x15c3   :  { %4538 = vrsqrt.f32 %v3806_v33 }
0x15c4   :  { %4540 = vrsqrt.f32 %v3805_v60 }
0x15cd   :  { %v4539_v61 = vpop.eup %4538 }
0x15ce   :  { %v4541_v0 = vpop.eup %4540  ;;  %v3810_v37 = vmul.f32 %v4539_v61, %v3794_v31 }
0x15cf   :  { %v3809_v1 = vmul.f32 %v4541_v0, %v3793_v39 }
0x15d0   :  { %v3818_v3 = vmul.f32 %v3973_v62, %v3810_v37 }
0x15d1   :  { %v3817_v4 = vmul.f32 %v3973_v62, %v3809_v1 }
0x15d2   :  { %v3826_v6 = vadd.f32 %v3974_v2, %v3818_v3 }
0x15d3   :  { %v3825_v7 = vadd.f32 %v3974_v2, %v3817_v4 }
0x15d4   :  { %v3834_v8 = vsel %vm66_vm0, %v3826_v6, 0.0 }
0x15d5   :  { %v3827_v9 = vsel %vm66_vm0, %v3825_v7, 0.0  ;;  %v3835_v10 = vrot.slane %v3834_v8, 4 }
0x15d6   :  { %v3828_v12 = vrot.slane %v3827_v9, 4 }
0x15d7   :  { %v3836_v13 = vadd.f32 %v3835_v10, %v3834_v8 }
0x15d8   :  { %v3829_v14 = vadd.f32 %v3828_v12, %v3827_v9 }
0x15d9   :  { %v3837_v16 = vrot.slane %v3836_v13, 2 }
0x15da   :  { %v3830_v15 = vrot.slane %v3829_v14, 2 }
0x15db   :  { %v3838_v19 = vadd.f32 %v3837_v16, %v3836_v13 }
0x15dc   :  { %v3831_v21 = vadd.f32 %v3830_v15, %v3829_v14 }
0x15dd   :  { %v3839_v17 = vrot.slane %v3838_v19, 1 }
0x15de   :  { %v3832_v22 = vrot.slane %v3831_v21, 1 }
0x15df   :  { %v3840_v23 = vadd.f32 %v3839_v17, %v3838_v19 }
0x15e0   :  { %v3833_v57 = vadd.f32 %v3832_v22, %v3831_v21 }
0x15e1   :  { %v3843_v24 = vmul.f32 0.125, %v3840_v23 }
0x15e2   :  { %v3842_v25 = vmul.f32 0.125, %v3833_v57 }
0x15e4   :  { %v3847_v26 = vsel %vm3846_vm7, %v3843_v24, %v3842_v25 }
0x15e5   :  { %3850 = vst.msk [vmem:[#allocation3] sm:$0x3] %vm3849_vm8, %v3847_v26 }
0x15e6   :  { %4553 = shalt.err (!%p4550_p4)
}
0x15e7   :  { %s4554_s20 = scalar_lea.hbm %s5352_s16, 32 }
0x15e8   :  { %p4555_p5 = scmp.ne.s32.totalorder %s5352_s16, %s4554_s20  ;;  %p4558_p6 = scmp.lt.u32.totalorder %s4554_s20, %s5352_s16 }
0x15ea   :  { %p4560_p7 = pnand %p4558_p6, %p4555_p5 }
0x15ec   :  { %4563 = shalt.err (!%p4560_p7)
}
0x15ed   :  { %3860 = dma.vmem_to_hbm [thread:$0]  %s3858_s15, 32, %s5352_s16, [#allocation4]  }
0x15ee   :  { %4564 = dma.done.wait [#allocation4], 32  }
0x15ef   :  { %4565 = vsyncadd [#allocation4], 4294967264 }
0x15f0   :  { %3864 = vsyncpa [#allocation4], 1 }

</bundles_post_ra>
